<compile_context>
chip_gen: v7x
topology: tpu7x:2x2x1
jax: 0.10.0
libtpu: 0.0.40
codegen_flags: <defaults>
</compile_context>

<pallas_src>
import jax
import jax.numpy as jnp
from jax.experimental import pallas as pl
from jax.experimental.pallas import tpu as pltpu

EPS = 1e-5
PAD = 128  # left/right zero border of the flat conv scratch (lane-aligned interior)
# TODO(synk): re-derive the VMEM budget per target when scaling to real ResNet
# shapes (v7x has only 64 MiB physical); at this toy shape everything is tiny.
VMEM_LIMIT_BYTES = 32 * 1024 * 1024


def _make_fused_block_kernel(H, W):
    HW = H * W

    def conv3x3(inp_f32, w_ref, flat_ref, patch_ref):
        """3x3 'SAME' conv of one (C, H*W) tile as a single im2col bf16 MXU matmul.

        inp_f32:   (C, HW) f32 activation (spatial flattened onto lanes).
        w_ref:     (Cout, 9*Cin) bf16 tap-major weights (MXU LHS).
        flat_ref:  (C, PAD + HW + PAD) f32 scratch; border is zero (written once),
                   only the lane-aligned interior is stored per call.
        patch_ref: (9*Cin, HW) f32 scratch; the im2col slab (never hits HBM).
        Returns (Cout, HW) f32.
        """
        C = inp_f32.shape[0]
        # Lane-aligned, unmasked interior store (offset PAD is a multiple of 128).
        flat_ref[:, PAD:PAD + HW] = inp_f32
        ww = jax.lax.broadcasted_iota(jnp.int32, (1, HW), 1) % W
        for kh in range(3):
            for kw in range(3):
                off = (kh - 1) * W + (kw - 1)
                # Static lane-offset slice; the zero border supplies the H-edge
                # padding for free (no padded-halo rebuild, no roll needed).
                v = flat_ref[:, PAD + off:PAD + off + HW]
                # W-edge handling: zero the columns that would wrap across rows.
                if kw == 0:
                    v = jnp.where(ww >= 1, v, 0.0)
                elif kw == 2:
                    v = jnp.where(ww <= W - 2, v, 0.0)
                tap = kh * 3 + kw
                patch_ref[tap * C:(tap + 1) * C, :] = v
        # ONE MXU matmul (contraction depth 9*Cin) instead of 9 accumulated ones.
        return jnp.dot(w_ref[...], patch_ref[...].astype(jnp.bfloat16),
                       preferred_element_type=jnp.float32)

    def kernel(x_ref, w1_ref, w2_ref, gamma_ref, beta_ref, o_ref,
               y_ref, flat_ref, patch_ref, sum_ref, sq_ref, scale_ref, shift_ref):
        # x_ref / o_ref: (C, HW) f32   current image (channels on sublanes, spatial on lanes)
        # w1_ref/w2_ref: (C, 9*C) bf16 ; gamma/beta: (C, 1) f32
        # y_ref: (N, C, HW) bf16 VMEM-resident inter-phase activation
        # sum_ref/sq_ref: (C, 1) f32 batch-stat accumulators (reused by both phases)
        # scale_ref/shift_ref: (C, 1) f32 folded BN affine (BN1 then BN2)
        phase = pl.program_id(0)
        n = pl.program_id(1)
        num_n = pl.num_programs(1)
        count = float(y_ref.shape[0] * HW)  # elements per channel over the batch

        @pl.when(jnp.logical_and(phase == 0, n == 0))
        def _():
            # Zero border written ONCE; the interior store never touches it.
            flat_ref[...] = jnp.zeros_like(flat_ref)

        @pl.when(jnp.logical_and(phase < 2, n == 0))
        def _():
            sum_ref[...] = jnp.zeros_like(sum_ref)
            sq_ref[...] = jnp.zeros_like(sq_ref)

        def accumulate(acc):
            sum_ref[...] += jnp.sum(acc, axis=1, keepdims=True)
            sq_ref[...] += jnp.sum(acc * acc, axis=1, keepdims=True)

        # ---------------- phase 0: conv1 + BN batch stats of y1 ----------------
        @pl.when(phase == 0)
        def _():
            y1 = conv3x3(x_ref[...], w1_ref, flat_ref, patch_ref)
            y_ref[n] = y1.astype(jnp.bfloat16)
            accumulate(y1)
            o_ref[...] = y1  # deterministic placeholder write; final write in phase 2

        # ------- phase 1: BN1 + ReLU on load, conv2 + BN batch stats of y2 -------
        @pl.when(phase == 1)
        def _():
            h = jnp.maximum(
                y_ref[n].astype(jnp.float32) * scale_ref[...] + shift_ref[...], 0.0)
            y2 = conv3x3(h, w2_ref, flat_ref, patch_ref)
            y_ref[n] = y2.astype(jnp.bfloat16)
            accumulate(y2)
            o_ref[...] = y2

        # --- end of each stats phase: fold batch stats + affine into scale/shift ---
        @pl.when(jnp.logical_and(phase < 2, n == num_n - 1))
        def _():
            mean = sum_ref[...] / count
            # TODO(synk): E[x^2]-mean^2 can cancel at realistic magnitudes; use a
            # shifted / Welford accumulation beyond toy scales.
            var = jnp.maximum(sq_ref[...] / count - mean * mean, 0.0)
            scale_ref[...] = gamma_ref[...] * jax.lax.rsqrt(var + EPS)
            shift_ref[...] = beta_ref[...] - mean * scale_ref[...]

        # ---------------- phase 2: BN2 + residual add + ReLU ----------------
        @pl.when(phase == 2)
        def _():
            o_ref[...] = jnp.maximum(
                y_ref[n].astype(jnp.float32) * scale_ref[...] + shift_ref[...]
                + x_ref[...], 0.0)

    return kernel


def block_forward(x_nchw, params):
    """Forward pass of `Block` (stride=1, i_downsample=None). NCHW in / NCHW out."""
    N, C, H, W = x_nchw.shape
    HW = H * W
    assert W + 1 <= PAD
    assert params["w1"].shape == (C, C, 3, 3) and params["w2"].shape == (C, C, 3, 3)

    x_flat = x_nchw.reshape(N, C, HW).astype(jnp.float32)
    # PyTorch OIHW -> (Cout, kh, kw, Cin) -> (Cout, 9*Cin), bf16 (MXU LHS).
    w1 = jnp.transpose(params["w1"], (0, 2, 3, 1)).reshape(C, 9 * C).astype(jnp.bfloat16)
    w2 = jnp.transpose(params["w2"], (0, 2, 3, 1)).reshape(C, 9 * C).astype(jnp.bfloat16)
    gamma = params["gamma2"].reshape(C, 1).astype(jnp.float32)
    beta = params["beta2"].reshape(C, 1).astype(jnp.float32)

    out_flat = pl.pallas_call(
        _make_fused_block_kernel(H, W),
        out_shape=jax.ShapeDtypeStruct((N, C, HW), jnp.float32),
        grid=(3, N),  # (phase, image); phase 0 = conv1, 1 = conv2, 2 = epilogue
        in_specs=[
            pl.BlockSpec((None, C, HW), lambda p, n: (n, 0, 0)),  # x (also residual)
            pl.BlockSpec((C, 9 * C), lambda p, n: (0, 0)),        # conv1 weights
            pl.BlockSpec((C, 9 * C), lambda p, n: (0, 0)),        # conv2 weights
            pl.BlockSpec((C, 1), lambda p, n: (0, 0)),            # gamma (batch_norm2)
            pl.BlockSpec((C, 1), lambda p, n: (0, 0)),            # beta  (batch_norm2)
        ],
        out_specs=pl.BlockSpec((None, C, HW), lambda p, n: (n, 0, 0)),
        scratch_shapes=[
            pltpu.VMEM((N, C, HW), jnp.bfloat16),           # y1/y2 (VMEM-resident)
            pltpu.VMEM((C, PAD + HW + PAD), jnp.float32),   # zero-bordered conv scratch
            pltpu.VMEM((9 * C, HW), jnp.float32),           # im2col slab
            pltpu.VMEM((C, 1), jnp.float32),                # BN sum accumulator
            pltpu.VMEM((C, 1), jnp.float32),                # BN sum-of-squares
            pltpu.VMEM((C, 1), jnp.float32),                # folded BN scale
            pltpu.VMEM((C, 1), jnp.float32),                # folded BN shift
        ],
        compiler_params=pltpu.CompilerParams(
            # Both axes carry cross-step state (stats, VMEM y, folded BN), so they
            # must stay sequential; see the scaling TODO at the top of the file for
            # the v7x-megacore ("parallel") variant at realistic shapes.
            dimension_semantics=("arbitrary", "arbitrary"),
            vmem_limit_bytes=VMEM_LIMIT_BYTES),
    )(x_flat, w1, w2, gamma, beta)
    return out_flat.reshape(N, C, H, W)


# ------------------------- pure-JAX reference (f32) ---------------------------

def _reference_forward(x, params):
    w1, w2 = params["w1"], params["w2"]
    g = params["gamma2"].reshape(1, -1, 1, 1)
    b = params["beta2"].reshape(1, -1, 1, 1)

    def conv(inp, w):
        return jax.lax.conv_general_dilated(
            inp, w, window_strides=(1, 1), padding="SAME",
            dimension_numbers=("NCHW", "OIHW", "NCHW"))

    def bn(y):  # training-mode BN with the batch_norm2 affine (used twice, as in torch)
        mean = jnp.mean(y, axis=(0, 2, 3), keepdims=True)
        var = jnp.var(y, axis=(0, 2, 3), keepdims=True)
        return (y - mean) * jax.lax.rsqrt(var + EPS) * g + b

    h = jax.nn.relu(bn(conv(x, w1)))
    return jax.nn.relu(bn(conv(h, w2)) + x)


# --------------------------------- main ----------------------------------------

if __name__ == "__main__":
    key = jax.random.PRNGKey(0)
    k_x, k_w1, k_w2, k_g, k_b = jax.random.split(key, 5)

    N, C, H, W = 2, 4, 16, 16  # in_channels == out_channels, stride=1
    x = jax.random.normal(k_x, (N, C, H, W), jnp.float32)

    params = {
        # conv weights in PyTorch OIHW layout, bias=False
        "w1": 0.1 * jax.random.normal(k_w1, (C, C, 3, 3), jnp.float32),
        "w2": 0.1 * jax.random.normal(k_w2, (C, C, 3, 3), jnp.float32),
        # batch_norm2 affine params (batch_norm1 exists in __init__ but is unused)
        "gamma2": 1.0 + 0.1 * jax.random.normal(k_g, (C,), jnp.float32),
        "beta2": 0.1 * jax.random.normal(k_b, (C,), jnp.float32),
    }

    out = jax.jit(block_forward)(x, params)
    jax.block_until_ready(out)
    assert out.shape == (N, C, H, W)

    # Sanity check against a pure-JAX reference (loose tol covers the bf16 MXU path
    # and the bf16 VMEM-resident intermediate).
    ref = _reference_forward(x, params)
    max_err = float(jnp.max(jnp.abs(out - ref)))
    assert max_err < 0.2, f"mismatch vs reference: max|diff|={max_err}"

    print("KERNEL_OK")
</pallas_src>

<mosaic_0001>
module attributes {stable_mosaic.version = 11 : i64} {
  func.func @kernel(%arg0: i32, %arg1: i32, %arg2: memref<1x4x256xf32, #tpu.memory_space<vmem>>, %arg3: memref<4x36xbf16, #tpu.memory_space<vmem>>, %arg4: memref<4x36xbf16, #tpu.memory_space<vmem>>, %arg5: memref<4x1xf32, #tpu.memory_space<vmem>>, %arg6: memref<4x1xf32, #tpu.memory_space<vmem>>, %arg7: memref<1x4x256xf32, #tpu.memory_space<vmem>>, %arg8: memref<2x4x256xbf16, #tpu.memory_space<vmem>>, %arg9: memref<4x512xf32, #tpu.memory_space<vmem>>, %arg10: memref<36x256xf32, #tpu.memory_space<vmem>>, %arg11: memref<4x1xf32, #tpu.memory_space<vmem>>, %arg12: memref<4x1xf32, #tpu.memory_space<vmem>>, %arg13: memref<4x1xf32, #tpu.memory_space<vmem>>, %arg14: memref<4x1xf32, #tpu.memory_space<vmem>>) attributes {dimension_semantics = [#tpu.dimension_semantics<arbitrary>, #tpu.dimension_semantics<arbitrary>], iteration_bounds = array<i64: 3, 2>, scalar_prefetch = 0 : i64, scratch_operands = 7 : i64, tpu.core_type = #tpu.core_type<tc>, window_params = [{transform_indices = @transform_0, window_bounds = array<i64: 1, 4, 256>}, {pipeline_mode = #tpu.pipeline_mode<synchronous>, transform_indices = @transform_1, window_bounds = array<i64: 4, 36>}, {pipeline_mode = #tpu.pipeline_mode<synchronous>, transform_indices = @transform_2, window_bounds = array<i64: 4, 36>}, {pipeline_mode = #tpu.pipeline_mode<synchronous>, transform_indices = @transform_3, window_bounds = array<i64: 4, 1>}, {pipeline_mode = #tpu.pipeline_mode<synchronous>, transform_indices = @transform_4, window_bounds = array<i64: 4, 1>}, {transform_indices = @transform_5, window_bounds = array<i64: 1, 4, 256>}]} {
    %c0_i32 = arith.constant 0 : i32
    %0 = arith.cmpi eq, %arg0, %c0_i32 : i32
    %c0_i32_0 = arith.constant 0 : i32
    %1 = arith.cmpi eq, %arg1, %c0_i32_0 : i32
    %2 = arith.andi %0, %1 : i1
    %3 = arith.extui %2 : i1 to i32
    %c0_i32_1 = arith.constant 0 : i32
    %4 = arith.cmpi ne, %3, %c0_i32_1 : i32
    scf.if %4 {
      %cst = arith.constant 0.000000e+00 : f32
      %24 = vector.broadcast %cst : f32 to vector<4x512xf32>
      %c0 = arith.constant 0 : index
      %c0_12 = arith.constant 0 : index
      %25 = vector.load %arg9[%c0, %c0_12] : memref<4x512xf32, #tpu.memory_space<vmem>>, vector<4x512xf32>
      tpu.vector_store %arg9[%c0, %c0_12], %24 {strides = array<i32>} : memref<4x512xf32, #tpu.memory_space<vmem>>, vector<4x512xf32>,
    } else {
    }
    %c2_i32 = arith.constant 2 : i32
    %5 = arith.cmpi slt, %arg0, %c2_i32 : i32
    %c0_i32_2 = arith.constant 0 : i32
    %6 = arith.cmpi eq, %arg1, %c0_i32_2 : i32
    %7 = arith.andi %5, %6 : i1
    %8 = arith.extui %7 : i1 to i32
    %c0_i32_3 = arith.constant 0 : i32
    %9 = arith.cmpi ne, %8, %c0_i32_3 : i32
    scf.if %9 {
      %cst = arith.constant 0.000000e+00 : f32
      %24 = vector.broadcast %cst : f32 to vector<4x1xf32>
      %c0 = arith.constant 0 : index
      %c0_12 = arith.constant 0 : index
      %25 = vector.load %arg11[%c0, %c0_12] : memref<4x1xf32, #tpu.memory_space<vmem>>, vector<4x1xf32>
      tpu.vector_store %arg11[%c0, %c0_12], %24 {strides = array<i32>} : memref<4x1xf32, #tpu.memory_space<vmem>>, vector<4x1xf32>,
      %cst_13 = arith.constant 0.000000e+00 : f32
      %26 = vector.broadcast %cst_13 : f32 to vector<4x1xf32>
      %c0_14 = arith.constant 0 : index
      %c0_15 = arith.constant 0 : index
      %27 = vector.load %arg12[%c0_14, %c0_15] : memref<4x1xf32, #tpu.memory_space<vmem>>, vector<4x1xf32>
      tpu.vector_store %arg12[%c0_14, %c0_15], %26 {strides = array<i32>} : memref<4x1xf32, #tpu.memory_space<vmem>>, vector<4x1xf32>,
    } else {
    }
    %c0_i32_4 = arith.constant 0 : i32
    %10 = arith.cmpi eq, %arg0, %c0_i32_4 : i32
    %11 = arith.extui %10 : i1 to i32
    %c0_i32_5 = arith.constant 0 : i32
    %12 = arith.cmpi ne, %11, %c0_i32_5 : i32
    scf.if %12 {
      %c0 = arith.constant 0 : index
      %c0_12 = arith.constant 0 : index
      %c0_13 = arith.constant 0 : index
      %24 = vector.load %arg2[%c0, %c0_12, %c0_13] : memref<1x4x256xf32, #tpu.memory_space<vmem>>, vector<1x4x256xf32>
      %25 = vector.shape_cast %24 : vector<1x4x256xf32> to vector<4x256xf32>
      %c0_14 = arith.constant 0 : index
      %c128 = arith.constant 128 : index
      %26 = vector.load %arg9[%c0_14, %c128] : memref<4x512xf32, #tpu.memory_space<vmem>>, vector<4x256xf32>
      tpu.vector_store %arg9[%c0_14, %c128], %25 {strides = array<i32>} : memref<4x512xf32, #tpu.memory_space<vmem>>, vector<4x256xf32>,
      %27 = tpu.iota {dimensions = array<i32: 1>} : vector<1x256xi32>
      %c16_i32 = arith.constant 16 : i32
      %c0_i32_15 = arith.constant 0 : i32
      %28 = arith.cmpi eq, %c16_i32, %c0_i32_15 : i32
      %c1_i32_16 = arith.constant 1 : i32
      %29 = arith.select %28, %c1_i32_16, %c16_i32 : i32
      %30 = vector.broadcast %29 : i32 to vector<1x256xi32>
      %31 = arith.remsi %27, %30 : vector<1x256xi32>
      %c0_i32_17 = arith.constant 0 : i32
      %32 = vector.broadcast %c0_i32_17 : i32 to vector<1x256xi32>
      %33 = arith.cmpi ne, %31, %32 : vector<1x256xi32>
      %c0_i32_18 = arith.constant 0 : i32
      %34 = vector.broadcast %c0_i32_18 : i32 to vector<1x256xi32>
      %35 = arith.cmpi slt, %31, %34 : vector<1x256xi32>
      %c0_i32_19 = arith.constant 0 : i32
      %36 = arith.cmpi slt, %29, %c0_i32_19 : i32
      %37 = vector.broadcast %36 : i1 to vector<1x256xi1>
      %38 = vector.broadcast %37 : vector<1x256xi1> to vector<1x256xi1>
      %39 = arith.xori %35, %38 : vector<1x256xi1>
      %40 = arith.andi %39, %33 : vector<1x256xi1>
      %41 = vector.broadcast %29 : i32 to vector<1x256xi32>
      %42 = arith.addi %31, %41 : vector<1x256xi32>
      %43 = arith.select %40, %42, %31 : vector<1x256xi1>, vector<1x256xi32>
      %c0_20 = arith.constant 0 : index
      %c111 = arith.constant 111 : index
      %44 = vector.load %arg9[%c0_20, %c111] : memref<4x512xf32, #tpu.memory_space<vmem>>, vector<4x256xf32>
      %c1_i32_21 = arith.constant 1 : i32
      %45 = vector.broadcast %c1_i32_21 : i32 to vector<1x256xi32>
      %46 = arith.cmpi sge, %43, %45 : vector<1x256xi32>
      %cst = arith.constant 0.000000e+00 : f32
      %47 = vector.shape_cast %46 : vector<1x256xi1> to vector<1x256xi1>
      %48 = vector.broadcast %47 : vector<1x256xi1> to vector<4x256xi1>
      %49 = vector.broadcast %cst : f32 to vector<4x256xf32>
      %50 = arith.select %48, %44, %49 : vector<4x256xi1>, vector<4x256xf32>
      %c0_22 = arith.constant 0 : index
      %c0_23 = arith.constant 0 : index
      %51 = vector.load %arg10[%c0_22, %c0_23] : memref<36x256xf32, #tpu.memory_space<vmem>>, vector<4x256xf32>
      tpu.vector_store %arg10[%c0_22, %c0_23], %50 {strides = array<i32>} : memref<36x256xf32, #tpu.memory_space<vmem>>, vector<4x256xf32>,
      %c0_24 = arith.constant 0 : index
      %c112 = arith.constant 112 : index
      %52 = vector.load %arg9[%c0_24, %c112] : memref<4x512xf32, #tpu.memory_space<vmem>>, vector<4x256xf32>
      %c4 = arith.constant 4 : index
      %c0_25 = arith.constant 0 : index
      %53 = vector.load %arg10[%c4, %c0_25] : memref<36x256xf32, #tpu.memory_space<vmem>>, vector<4x256xf32>
      tpu.vector_store %arg10[%c4, %c0_25], %52 {strides = array<i32>} : memref<36x256xf32, #tpu.memory_space<vmem>>, vector<4x256xf32>,
      %c0_26 = arith.constant 0 : index
      %c113 = arith.constant 113 : index
      %54 = vector.load %arg9[%c0_26, %c113] : memref<4x512xf32, #tpu.memory_space<vmem>>, vector<4x256xf32>
      %c14_i32 = arith.constant 14 : i32
      %55 = vector.broadcast %c14_i32 : i32 to vector<1x256xi32>
      %56 = arith.cmpi sle, %43, %55 : vector<1x256xi32>
      %cst_27 = arith.constant 0.000000e+00 : f32
      %57 = vector.shape_cast %56 : vector<1x256xi1> to vector<1x256xi1>
      %58 = vector.broadcast %57 : vector<1x256xi1> to vector<4x256xi1>
      %59 = vector.broadcast %cst_27 : f32 to vector<4x256xf32>
      %60 = arith.select %58, %54, %59 : vector<4x256xi1>, vector<4x256xf32>
      %c8 = arith.constant 8 : index
      %c0_28 = arith.constant 0 : index
      %61 = vector.load %arg10[%c8, %c0_28] : memref<36x256xf32, #tpu.memory_space<vmem>>, vector<4x256xf32>
      tpu.vector_store %arg10[%c8, %c0_28], %60 {strides = array<i32>} : memref<36x256xf32, #tpu.memory_space<vmem>>, vector<4x256xf32>,
      %c0_29 = arith.constant 0 : index
      %c127 = arith.constant 127 : index
      %62 = vector.load %arg9[%c0_29, %c127] : memref<4x512xf32, #tpu.memory_space<vmem>>, vector<4x256xf32>
      %c1_i32_30 = arith.constant 1 : i32
      %63 = vector.broadcast %c1_i32_30 : i32 to vector<1x256xi32>
      %64 = arith.cmpi sge, %43, %63 : vector<1x256xi32>
      %cst_31 = arith.constant 0.000000e+00 : f32
      %65 = vector.shape_cast %64 : vector<1x256xi1> to vector<1x256xi1>
      %66 = vector.broadcast %65 : vector<1x256xi1> to vector<4x256xi1>
      %67 = vector.broadcast %cst_31 : f32 to vector<4x256xf32>
      %68 = arith.select %66, %62, %67 : vector<4x256xi1>, vector<4x256xf32>
      %c12 = arith.constant 12 : index
      %c0_32 = arith.constant 0 : index
      %69 = vector.load %arg10[%c12, %c0_32] : memref<36x256xf32, #tpu.memory_space<vmem>>, vector<4x256xf32>
      tpu.vector_store %arg10[%c12, %c0_32], %68 {strides = array<i32>} : memref<36x256xf32, #tpu.memory_space<vmem>>, vector<4x256xf32>,
      %c0_33 = arith.constant 0 : index
      %c128_34 = arith.constant 128 : index
      %70 = vector.load %arg9[%c0_33, %c128_34] : memref<4x512xf32, #tpu.memory_space<vmem>>, vector<4x256xf32>
      %c16 = arith.constant 16 : index
      %c0_35 = arith.constant 0 : index
      %71 = vector.load %arg10[%c16, %c0_35] : memref<36x256xf32, #tpu.memory_space<vmem>>, vector<4x256xf32>
      tpu.vector_store %arg10[%c16, %c0_35], %70 {strides = array<i32>} : memref<36x256xf32, #tpu.memory_space<vmem>>, vector<4x256xf32>,
      %c0_36 = arith.constant 0 : index
      %c129 = arith.constant 129 : index
      %72 = vector.load %arg9[%c0_36, %c129] : memref<4x512xf32, #tpu.memory_space<vmem>>, vector<4x256xf32>
      %c14_i32_37 = arith.constant 14 : i32
      %73 = vector.broadcast %c14_i32_37 : i32 to vector<1x256xi32>
      %74 = arith.cmpi sle, %43, %73 : vector<1x256xi32>
      %cst_38 = arith.constant 0.000000e+00 : f32
      %75 = vector.shape_cast %74 : vector<1x256xi1> to vector<1x256xi1>
      %76 = vector.broadcast %75 : vector<1x256xi1> to vector<4x256xi1>
      %77 = vector.broadcast %cst_38 : f32 to vector<4x256xf32>
      %78 = arith.select %76, %72, %77 : vector<4x256xi1>, vector<4x256xf32>
      %c20 = arith.constant 20 : index
      %c0_39 = arith.constant 0 : index
      %79 = vector.load %arg10[%c20, %c0_39] : memref<36x256xf32, #tpu.memory_space<vmem>>, vector<4x256xf32>
      tpu.vector_store %arg10[%c20, %c0_39], %78 {strides = array<i32>} : memref<36x256xf32, #tpu.memory_space<vmem>>, vector<4x256xf32>,
      %c0_40 = arith.constant 0 : index
      %c143 = arith.constant 143 : index
      %80 = vector.load %arg9[%c0_40, %c143] : memref<4x512xf32, #tpu.memory_space<vmem>>, vector<4x256xf32>
      %c1_i32_41 = arith.constant 1 : i32
      %81 = vector.broadcast %c1_i32_41 : i32 to vector<1x256xi32>
      %82 = arith.cmpi sge, %43, %81 : vector<1x256xi32>
      %cst_42 = arith.constant 0.000000e+00 : f32
      %83 = vector.shape_cast %82 : vector<1x256xi1> to vector<1x256xi1>
      %84 = vector.broadcast %83 : vector<1x256xi1> to vector<4x256xi1>
      %85 = vector.broadcast %cst_42 : f32 to vector<4x256xf32>
      %86 = arith.select %84, %80, %85 : vector<4x256xi1>, vector<4x256xf32>
      %c24 = arith.constant 24 : index
      %c0_43 = arith.constant 0 : index
      %87 = vector.load %arg10[%c24, %c0_43] : memref<36x256xf32, #tpu.memory_space<vmem>>, vector<4x256xf32>
      tpu.vector_store %arg10[%c24, %c0_43], %86 {strides = array<i32>} : memref<36x256xf32, #tpu.memory_space<vmem>>, vector<4x256xf32>,
      %c0_44 = arith.constant 0 : index
      %c144 = arith.constant 144 : index
      %88 = vector.load %arg9[%c0_44, %c144] : memref<4x512xf32, #tpu.memory_space<vmem>>, vector<4x256xf32>
      %c28 = arith.constant 28 : index
      %c0_45 = arith.constant 0 : index
      %89 = vector.load %arg10[%c28, %c0_45] : memref<36x256xf32, #tpu.memory_space<vmem>>, vector<4x256xf32>
      tpu.vector_store %arg10[%c28, %c0_45], %88 {strides = array<i32>} : memref<36x256xf32, #tpu.memory_space<vmem>>, vector<4x256xf32>,
      %c0_46 = arith.constant 0 : index
      %c145 = arith.constant 145 : index
      %90 = vector.load %arg9[%c0_46, %c145] : memref<4x512xf32, #tpu.memory_space<vmem>>, vector<4x256xf32>
      %c14_i32_47 = arith.constant 14 : i32
      %91 = vector.broadcast %c14_i32_47 : i32 to vector<1x256xi32>
      %92 = arith.cmpi sle, %43, %91 : vector<1x256xi32>
      %cst_48 = arith.constant 0.000000e+00 : f32
      %93 = vector.shape_cast %92 : vector<1x256xi1> to vector<1x256xi1>
      %94 = vector.broadcast %93 : vector<1x256xi1> to vector<4x256xi1>
      %95 = vector.broadcast %cst_48 : f32 to vector<4x256xf32>
      %96 = arith.select %94, %90, %95 : vector<4x256xi1>, vector<4x256xf32>
      %c32 = arith.constant 32 : index
      %c0_49 = arith.constant 0 : index
      %97 = vector.load %arg10[%c32, %c0_49] : memref<36x256xf32, #tpu.memory_space<vmem>>, vector<4x256xf32>
      tpu.vector_store %arg10[%c32, %c0_49], %96 {strides = array<i32>} : memref<36x256xf32, #tpu.memory_space<vmem>>, vector<4x256xf32>,
      %c0_50 = arith.constant 0 : index
      %c0_51 = arith.constant 0 : index
      %98 = vector.load %arg3[%c0_50, %c0_51] : memref<4x36xbf16, #tpu.memory_space<vmem>>, vector<4x36xbf16>
      %c0_52 = arith.constant 0 : index
      %c0_53 = arith.constant 0 : index
      %99 = vector.load %arg10[%c0_52, %c0_53] : memref<36x256xf32, #tpu.memory_space<vmem>>, vector<36x256xf32>
      %100 = arith.truncf %99 : vector<36x256xf32> to vector<36x256xbf16>
      %cst_54 = arith.constant dense<0.000000e+00> : vector<4x256xf32>
      %101 = tpu.matmul %98, %100, %cst_54 {dimension_numbers = #tpu.dot_dimension_numbers<[1], [0], [0], [1], [0, 0, 1, 1], [], []>} : vector<4x36xbf16>, vector<36x256xbf16>, vector<4x256xf32> -> vector<4x256xf32>
      %102 = arith.truncf %101 : vector<4x256xf32> to vector<4x256xbf16>
      %103 = arith.index_cast %arg1 : i32 to index
      %c0_55 = arith.constant 0 : index
      %c0_56 = arith.constant 0 : index
      %104 = vector.load %arg8[%103, %c0_55, %c0_56] : memref<2x4x256xbf16, #tpu.memory_space<vmem>>, vector<1x4x256xbf16>
      %105 = vector.shape_cast %104 : vector<1x4x256xbf16> to vector<4x256xbf16>
      %106 = vector.shape_cast %102 : vector<4x256xbf16> to vector<1x4x256xbf16>
      tpu.vector_store %arg8[%103, %c0_55, %c0_56], %106 {strides = array<i32>} : memref<2x4x256xbf16, #tpu.memory_space<vmem>>, vector<1x4x256xbf16>,
      %c0_57 = arith.constant 0 : index
      %c0_58 = arith.constant 0 : index
      %107 = vector.load %arg11[%c0_57, %c0_58] : memref<4x1xf32, #tpu.memory_space<vmem>>, vector<4x1xf32>
      %cst_59 = arith.constant dense<0.000000e+00> : vector<4xf32>
      %108 = vector.multi_reduction <add>, %101, %cst_59 [1] : vector<4x256xf32> to vector<4xf32>
      %109 = vector.shape_cast %108 : vector<4xf32> to vector<4x1xf32>
      %110 = arith.addf %107, %109 : vector<4x1xf32>
      %c0_60 = arith.constant 0 : index
      %c0_61 = arith.constant 0 : index
      %111 = vector.load %arg11[%c0_60, %c0_61] : memref<4x1xf32, #tpu.memory_space<vmem>>, vector<4x1xf32>
      tpu.vector_store %arg11[%c0_60, %c0_61], %110 {strides = array<i32>} : memref<4x1xf32, #tpu.memory_space<vmem>>, vector<4x1xf32>,
      %c0_62 = arith.constant 0 : index
      %c0_63 = arith.constant 0 : index
      %112 = vector.load %arg12[%c0_62, %c0_63] : memref<4x1xf32, #tpu.memory_space<vmem>>, vector<4x1xf32>
      %113 = arith.mulf %101, %101 : vector<4x256xf32>
      %cst_64 = arith.constant dense<0.000000e+00> : vector<4xf32>
      %114 = vector.multi_reduction <add>, %113, %cst_64 [1] : vector<4x256xf32> to vector<4xf32>
      %115 = vector.shape_cast %114 : vector<4xf32> to vector<4x1xf32>
      %116 = arith.addf %112, %115 : vector<4x1xf32>
      %c0_65 = arith.constant 0 : index
      %c0_66 = arith.constant 0 : index
      %117 = vector.load %arg12[%c0_65, %c0_66] : memref<4x1xf32, #tpu.memory_space<vmem>>, vector<4x1xf32>
      tpu.vector_store %arg12[%c0_65, %c0_66], %116 {strides = array<i32>} : memref<4x1xf32, #tpu.memory_space<vmem>>, vector<4x1xf32>,
      %c0_67 = arith.constant 0 : index
      %c0_68 = arith.constant 0 : index
      %c0_69 = arith.constant 0 : index
      %118 = vector.load %arg7[%c0_67, %c0_68, %c0_69] : memref<1x4x256xf32, #tpu.memory_space<vmem>>, vector<1x4x256xf32>
      %119 = vector.shape_cast %118 : vector<1x4x256xf32> to vector<4x256xf32>
      %120 = vector.shape_cast %101 : vector<4x256xf32> to vector<1x4x256xf32>
      tpu.vector_store %arg7[%c0_67, %c0_68, %c0_69], %120 {strides = array<i32>} : memref<1x4x256xf32, #tpu.memory_space<vmem>>, vector<1x4x256xf32>,
    } else {
    }
    %c1_i32 = arith.constant 1 : i32
    %13 = arith.cmpi eq, %arg0, %c1_i32 : i32
    %14 = arith.extui %13 : i1 to i32
    %c0_i32_6 = arith.constant 0 : i32
    %15 = arith.cmpi ne, %14, %c0_i32_6 : i32
    scf.if %15 {
      %24 = arith.index_cast %arg1 : i32 to index
      %c0 = arith.constant 0 : index
      %c0_12 = arith.constant 0 : index
      %25 = vector.load %arg8[%24, %c0, %c0_12] : memref<2x4x256xbf16, #tpu.memory_space<vmem>>, vector<1x4x256xbf16>
      %26 = vector.shape_cast %25 : vector<1x4x256xbf16> to vector<4x256xbf16>
      %27 = arith.extf %26 : vector<4x256xbf16> to vector<4x256xf32>
      %c0_13 = arith.constant 0 : index
      %c0_14 = arith.constant 0 : index
      %28 = vector.load %arg13[%c0_13, %c0_14] : memref<4x1xf32, #tpu.memory_space<vmem>>, vector<4x1xf32>
      %29 = vector.broadcast %28 : vector<4x1xf32> to vector<4x256xf32>
      %30 = arith.mulf %27, %29 : vector<4x256xf32>
      %c0_15 = arith.constant 0 : index
      %c0_16 = arith.constant 0 : index
      %31 = vector.load %arg14[%c0_15, %c0_16] : memref<4x1xf32, #tpu.memory_space<vmem>>, vector<4x1xf32>
      %32 = vector.broadcast %31 : vector<4x1xf32> to vector<4x256xf32>
      %33 = arith.addf %30, %32 : vector<4x256xf32>
      %cst = arith.constant 0.000000e+00 : f32
      %34 = vector.broadcast %cst : f32 to vector<4x256xf32>
      %35 = arith.maximumf %33, %34 : vector<4x256xf32>
      %c0_17 = arith.constant 0 : index
      %c128 = arith.constant 128 : index
      %36 = vector.load %arg9[%c0_17, %c128] : memref<4x512xf32, #tpu.memory_space<vmem>>, vector<4x256xf32>
      tpu.vector_store %arg9[%c0_17, %c128], %35 {strides = array<i32>} : memref<4x512xf32, #tpu.memory_space<vmem>>, vector<4x256xf32>,
      %37 = tpu.iota {dimensions = array<i32: 1>} : vector<1x256xi32>
      %c16_i32 = arith.constant 16 : i32
      %c0_i32_18 = arith.constant 0 : i32
      %38 = arith.cmpi eq, %c16_i32, %c0_i32_18 : i32
      %c1_i32_19 = arith.constant 1 : i32
      %39 = arith.select %38, %c1_i32_19, %c16_i32 : i32
      %40 = vector.broadcast %39 : i32 to vector<1x256xi32>
      %41 = arith.remsi %37, %40 : vector<1x256xi32>
      %c0_i32_20 = arith.constant 0 : i32
      %42 = vector.broadcast %c0_i32_20 : i32 to vector<1x256xi32>
      %43 = arith.cmpi ne, %41, %42 : vector<1x256xi32>
      %c0_i32_21 = arith.constant 0 : i32
      %44 = vector.broadcast %c0_i32_21 : i32 to vector<1x256xi32>
      %45 = arith.cmpi slt, %41, %44 : vector<1x256xi32>
      %c0_i32_22 = arith.constant 0 : i32
      %46 = arith.cmpi slt, %39, %c0_i32_22 : i32
      %47 = vector.broadcast %46 : i1 to vector<1x256xi1>
      %48 = vector.broadcast %47 : vector<1x256xi1> to vector<1x256xi1>
      %49 = arith.xori %45, %48 : vector<1x256xi1>
      %50 = arith.andi %49, %43 : vector<1x256xi1>
      %51 = vector.broadcast %39 : i32 to vector<1x256xi32>
      %52 = arith.addi %41, %51 : vector<1x256xi32>
      %53 = arith.select %50, %52, %41 : vector<1x256xi1>, vector<1x256xi32>
      %c0_23 = arith.constant 0 : index
      %c111 = arith.constant 111 : index
      %54 = vector.load %arg9[%c0_23, %c111] : memref<4x512xf32, #tpu.memory_space<vmem>>, vector<4x256xf32>
      %c1_i32_24 = arith.constant 1 : i32
      %55 = vector.broadcast %c1_i32_24 : i32 to vector<1x256xi32>
      %56 = arith.cmpi sge, %53, %55 : vector<1x256xi32>
      %cst_25 = arith.constant 0.000000e+00 : f32
      %57 = vector.shape_cast %56 : vector<1x256xi1> to vector<1x256xi1>
      %58 = vector.broadcast %57 : vector<1x256xi1> to vector<4x256xi1>
      %59 = vector.broadcast %cst_25 : f32 to vector<4x256xf32>
      %60 = arith.select %58, %54, %59 : vector<4x256xi1>, vector<4x256xf32>
      %c0_26 = arith.constant 0 : index
      %c0_27 = arith.constant 0 : index
      %61 = vector.load %arg10[%c0_26, %c0_27] : memref<36x256xf32, #tpu.memory_space<vmem>>, vector<4x256xf32>
      tpu.vector_store %arg10[%c0_26, %c0_27], %60 {strides = array<i32>} : memref<36x256xf32, #tpu.memory_space<vmem>>, vector<4x256xf32>,
      %c0_28 = arith.constant 0 : index
      %c112 = arith.constant 112 : index
      %62 = vector.load %arg9[%c0_28, %c112] : memref<4x512xf32, #tpu.memory_space<vmem>>, vector<4x256xf32>
      %c4 = arith.constant 4 : index
      %c0_29 = arith.constant 0 : index
      %63 = vector.load %arg10[%c4, %c0_29] : memref<36x256xf32, #tpu.memory_space<vmem>>, vector<4x256xf32>
      tpu.vector_store %arg10[%c4, %c0_29], %62 {strides = array<i32>} : memref<36x256xf32, #tpu.memory_space<vmem>>, vector<4x256xf32>,
      %c0_30 = arith.constant 0 : index
      %c113 = arith.constant 113 : index
      %64 = vector.load %arg9[%c0_30, %c113] : memref<4x512xf32, #tpu.memory_space<vmem>>, vector<4x256xf32>
      %c14_i32 = arith.constant 14 : i32
      %65 = vector.broadcast %c14_i32 : i32 to vector<1x256xi32>
      %66 = arith.cmpi sle, %53, %65 : vector<1x256xi32>
      %cst_31 = arith.constant 0.000000e+00 : f32
      %67 = vector.shape_cast %66 : vector<1x256xi1> to vector<1x256xi1>
      %68 = vector.broadcast %67 : vector<1x256xi1> to vector<4x256xi1>
      %69 = vector.broadcast %cst_31 : f32 to vector<4x256xf32>
      %70 = arith.select %68, %64, %69 : vector<4x256xi1>, vector<4x256xf32>
      %c8 = arith.constant 8 : index
      %c0_32 = arith.constant 0 : index
      %71 = vector.load %arg10[%c8, %c0_32] : memref<36x256xf32, #tpu.memory_space<vmem>>, vector<4x256xf32>
      tpu.vector_store %arg10[%c8, %c0_32], %70 {strides = array<i32>} : memref<36x256xf32, #tpu.memory_space<vmem>>, vector<4x256xf32>,
      %c0_33 = arith.constant 0 : index
      %c127 = arith.constant 127 : index
      %72 = vector.load %arg9[%c0_33, %c127] : memref<4x512xf32, #tpu.memory_space<vmem>>, vector<4x256xf32>
      %c1_i32_34 = arith.constant 1 : i32
      %73 = vector.broadcast %c1_i32_34 : i32 to vector<1x256xi32>
      %74 = arith.cmpi sge, %53, %73 : vector<1x256xi32>
      %cst_35 = arith.constant 0.000000e+00 : f32
      %75 = vector.shape_cast %74 : vector<1x256xi1> to vector<1x256xi1>
      %76 = vector.broadcast %75 : vector<1x256xi1> to vector<4x256xi1>
      %77 = vector.broadcast %cst_35 : f32 to vector<4x256xf32>
      %78 = arith.select %76, %72, %77 : vector<4x256xi1>, vector<4x256xf32>
      %c12 = arith.constant 12 : index
      %c0_36 = arith.constant 0 : index
      %79 = vector.load %arg10[%c12, %c0_36] : memref<36x256xf32, #tpu.memory_space<vmem>>, vector<4x256xf32>
      tpu.vector_store %arg10[%c12, %c0_36], %78 {strides = array<i32>} : memref<36x256xf32, #tpu.memory_space<vmem>>, vector<4x256xf32>,
      %c0_37 = arith.constant 0 : index
      %c128_38 = arith.constant 128 : index
      %80 = vector.load %arg9[%c0_37, %c128_38] : memref<4x512xf32, #tpu.memory_space<vmem>>, vector<4x256xf32>
      %c16 = arith.constant 16 : index
      %c0_39 = arith.constant 0 : index
      %81 = vector.load %arg10[%c16, %c0_39] : memref<36x256xf32, #tpu.memory_space<vmem>>, vector<4x256xf32>
      tpu.vector_store %arg10[%c16, %c0_39], %80 {strides = array<i32>} : memref<36x256xf32, #tpu.memory_space<vmem>>, vector<4x256xf32>,
      %c0_40 = arith.constant 0 : index
      %c129 = arith.constant 129 : index
      %82 = vector.load %arg9[%c0_40, %c129] : memref<4x512xf32, #tpu.memory_space<vmem>>, vector<4x256xf32>
      %c14_i32_41 = arith.constant 14 : i32
      %83 = vector.broadcast %c14_i32_41 : i32 to vector<1x256xi32>
      %84 = arith.cmpi sle, %53, %83 : vector<1x256xi32>
      %cst_42 = arith.constant 0.000000e+00 : f32
      %85 = vector.shape_cast %84 : vector<1x256xi1> to vector<1x256xi1>
      %86 = vector.broadcast %85 : vector<1x256xi1> to vector<4x256xi1>
      %87 = vector.broadcast %cst_42 : f32 to vector<4x256xf32>
      %88 = arith.select %86, %82, %87 : vector<4x256xi1>, vector<4x256xf32>
      %c20 = arith.constant 20 : index
      %c0_43 = arith.constant 0 : index
      %89 = vector.load %arg10[%c20, %c0_43] : memref<36x256xf32, #tpu.memory_space<vmem>>, vector<4x256xf32>
      tpu.vector_store %arg10[%c20, %c0_43], %88 {strides = array<i32>} : memref<36x256xf32, #tpu.memory_space<vmem>>, vector<4x256xf32>,
      %c0_44 = arith.constant 0 : index
      %c143 = arith.constant 143 : index
      %90 = vector.load %arg9[%c0_44, %c143] : memref<4x512xf32, #tpu.memory_space<vmem>>, vector<4x256xf32>
      %c1_i32_45 = arith.constant 1 : i32
      %91 = vector.broadcast %c1_i32_45 : i32 to vector<1x256xi32>
      %92 = arith.cmpi sge, %53, %91 : vector<1x256xi32>
      %cst_46 = arith.constant 0.000000e+00 : f32
      %93 = vector.shape_cast %92 : vector<1x256xi1> to vector<1x256xi1>
      %94 = vector.broadcast %93 : vector<1x256xi1> to vector<4x256xi1>
      %95 = vector.broadcast %cst_46 : f32 to vector<4x256xf32>
      %96 = arith.select %94, %90, %95 : vector<4x256xi1>, vector<4x256xf32>
      %c24 = arith.constant 24 : index
      %c0_47 = arith.constant 0 : index
      %97 = vector.load %arg10[%c24, %c0_47] : memref<36x256xf32, #tpu.memory_space<vmem>>, vector<4x256xf32>
      tpu.vector_store %arg10[%c24, %c0_47], %96 {strides = array<i32>} : memref<36x256xf32, #tpu.memory_space<vmem>>, vector<4x256xf32>,
      %c0_48 = arith.constant 0 : index
      %c144 = arith.constant 144 : index
      %98 = vector.load %arg9[%c0_48, %c144] : memref<4x512xf32, #tpu.memory_space<vmem>>, vector<4x256xf32>
      %c28 = arith.constant 28 : index
      %c0_49 = arith.constant 0 : index
      %99 = vector.load %arg10[%c28, %c0_49] : memref<36x256xf32, #tpu.memory_space<vmem>>, vector<4x256xf32>
      tpu.vector_store %arg10[%c28, %c0_49], %98 {strides = array<i32>} : memref<36x256xf32, #tpu.memory_space<vmem>>, vector<4x256xf32>,
      %c0_50 = arith.constant 0 : index
      %c145 = arith.constant 145 : index
      %100 = vector.load %arg9[%c0_50, %c145] : memref<4x512xf32, #tpu.memory_space<vmem>>, vector<4x256xf32>
      %c14_i32_51 = arith.constant 14 : i32
      %101 = vector.broadcast %c14_i32_51 : i32 to vector<1x256xi32>
      %102 = arith.cmpi sle, %53, %101 : vector<1x256xi32>
      %cst_52 = arith.constant 0.000000e+00 : f32
      %103 = vector.shape_cast %102 : vector<1x256xi1> to vector<1x256xi1>
      %104 = vector.broadcast %103 : vector<1x256xi1> to vector<4x256xi1>
      %105 = vector.broadcast %cst_52 : f32 to vector<4x256xf32>
      %106 = arith.select %104, %100, %105 : vector<4x256xi1>, vector<4x256xf32>
      %c32 = arith.constant 32 : index
      %c0_53 = arith.constant 0 : index
      %107 = vector.load %arg10[%c32, %c0_53] : memref<36x256xf32, #tpu.memory_space<vmem>>, vector<4x256xf32>
      tpu.vector_store %arg10[%c32, %c0_53], %106 {strides = array<i32>} : memref<36x256xf32, #tpu.memory_space<vmem>>, vector<4x256xf32>,
      %c0_54 = arith.constant 0 : index
      %c0_55 = arith.constant 0 : index
      %108 = vector.load %arg4[%c0_54, %c0_55] : memref<4x36xbf16, #tpu.memory_space<vmem>>, vector<4x36xbf16>
      %c0_56 = arith.constant 0 : index
      %c0_57 = arith.constant 0 : index
      %109 = vector.load %arg10[%c0_56, %c0_57] : memref<36x256xf32, #tpu.memory_space<vmem>>, vector<36x256xf32>
      %110 = arith.truncf %109 : vector<36x256xf32> to vector<36x256xbf16>
      %cst_58 = arith.constant dense<0.000000e+00> : vector<4x256xf32>
      %111 = tpu.matmul %108, %110, %cst_58 {dimension_numbers = #tpu.dot_dimension_numbers<[1], [0], [0], [1], [0, 0, 1, 1], [], []>} : vector<4x36xbf16>, vector<36x256xbf16>, vector<4x256xf32> -> vector<4x256xf32>
      %112 = arith.truncf %111 : vector<4x256xf32> to vector<4x256xbf16>
      %113 = arith.index_cast %arg1 : i32 to index
      %c0_59 = arith.constant 0 : index
      %c0_60 = arith.constant 0 : index
      %114 = vector.load %arg8[%113, %c0_59, %c0_60] : memref<2x4x256xbf16, #tpu.memory_space<vmem>>, vector<1x4x256xbf16>
      %115 = vector.shape_cast %114 : vector<1x4x256xbf16> to vector<4x256xbf16>
      %116 = vector.shape_cast %112 : vector<4x256xbf16> to vector<1x4x256xbf16>
      tpu.vector_store %arg8[%113, %c0_59, %c0_60], %116 {strides = array<i32>} : memref<2x4x256xbf16, #tpu.memory_space<vmem>>, vector<1x4x256xbf16>,
      %c0_61 = arith.constant 0 : index
      %c0_62 = arith.constant 0 : index
      %117 = vector.load %arg11[%c0_61, %c0_62] : memref<4x1xf32, #tpu.memory_space<vmem>>, vector<4x1xf32>
      %cst_63 = arith.constant dense<0.000000e+00> : vector<4xf32>
      %118 = vector.multi_reduction <add>, %111, %cst_63 [1] : vector<4x256xf32> to vector<4xf32>
      %119 = vector.shape_cast %118 : vector<4xf32> to vector<4x1xf32>
      %120 = arith.addf %117, %119 : vector<4x1xf32>
      %c0_64 = arith.constant 0 : index
      %c0_65 = arith.constant 0 : index
      %121 = vector.load %arg11[%c0_64, %c0_65] : memref<4x1xf32, #tpu.memory_space<vmem>>, vector<4x1xf32>
      tpu.vector_store %arg11[%c0_64, %c0_65], %120 {strides = array<i32>} : memref<4x1xf32, #tpu.memory_space<vmem>>, vector<4x1xf32>,
      %c0_66 = arith.constant 0 : index
      %c0_67 = arith.constant 0 : index
      %122 = vector.load %arg12[%c0_66, %c0_67] : memref<4x1xf32, #tpu.memory_space<vmem>>, vector<4x1xf32>
      %123 = arith.mulf %111, %111 : vector<4x256xf32>
      %cst_68 = arith.constant dense<0.000000e+00> : vector<4xf32>
      %124 = vector.multi_reduction <add>, %123, %cst_68 [1] : vector<4x256xf32> to vector<4xf32>
      %125 = vector.shape_cast %124 : vector<4xf32> to vector<4x1xf32>
      %126 = arith.addf %122, %125 : vector<4x1xf32>
      %c0_69 = arith.constant 0 : index
      %c0_70 = arith.constant 0 : index
      %127 = vector.load %arg12[%c0_69, %c0_70] : memref<4x1xf32, #tpu.memory_space<vmem>>, vector<4x1xf32>
      tpu.vector_store %arg12[%c0_69, %c0_70], %126 {strides = array<i32>} : memref<4x1xf32, #tpu.memory_space<vmem>>, vector<4x1xf32>,
      %c0_71 = arith.constant 0 : index
      %c0_72 = arith.constant 0 : index
      %c0_73 = arith.constant 0 : index
      %128 = vector.load %arg7[%c0_71, %c0_72, %c0_73] : memref<1x4x256xf32, #tpu.memory_space<vmem>>, vector<1x4x256xf32>
      %129 = vector.shape_cast %128 : vector<1x4x256xf32> to vector<4x256xf32>
      %130 = vector.shape_cast %111 : vector<4x256xf32> to vector<1x4x256xf32>
      tpu.vector_store %arg7[%c0_71, %c0_72, %c0_73], %130 {strides = array<i32>} : memref<1x4x256xf32, #tpu.memory_space<vmem>>, vector<1x4x256xf32>,
    } else {
    }
    %c2_i32_7 = arith.constant 2 : i32
    %16 = arith.cmpi slt, %arg0, %c2_i32_7 : i32
    %c1_i32_8 = arith.constant 1 : i32
    %17 = arith.cmpi eq, %arg1, %c1_i32_8 : i32
    %18 = arith.andi %16, %17 : i1
    %19 = arith.extui %18 : i1 to i32
    %c0_i32_9 = arith.constant 0 : i32
    %20 = arith.cmpi ne, %19, %c0_i32_9 : i32
    scf.if %20 {
      %c0 = arith.constant 0 : index
      %c0_12 = arith.constant 0 : index
      %24 = vector.load %arg11[%c0, %c0_12] : memref<4x1xf32, #tpu.memory_space<vmem>>, vector<4x1xf32>
      %cst = arith.constant 5.120000e+02 : f32
      %25 = vector.broadcast %cst : f32 to vector<4x1xf32>
      %26 = arith.divf %24, %25 : vector<4x1xf32>
      %c0_13 = arith.constant 0 : index
      %c0_14 = arith.constant 0 : index
      %27 = vector.load %arg12[%c0_13, %c0_14] : memref<4x1xf32, #tpu.memory_space<vmem>>, vector<4x1xf32>
      %cst_15 = arith.constant 5.120000e+02 : f32
      %28 = vector.broadcast %cst_15 : f32 to vector<4x1xf32>
      %29 = arith.divf %27, %28 : vector<4x1xf32>
      %30 = arith.mulf %26, %26 : vector<4x1xf32>
      %31 = arith.subf %29, %30 : vector<4x1xf32>
      %cst_16 = arith.constant 0.000000e+00 : f32
      %32 = vector.broadcast %cst_16 : f32 to vector<4x1xf32>
      %33 = arith.maximumf %31, %32 : vector<4x1xf32>
      %c0_17 = arith.constant 0 : index
      %c0_18 = arith.constant 0 : index
      %34 = vector.load %arg5[%c0_17, %c0_18] : memref<4x1xf32, #tpu.memory_space<vmem>>, vector<4x1xf32>
      %cst_19 = arith.constant 9.99999974E-6 : f32
      %35 = vector.broadcast %cst_19 : f32 to vector<4x1xf32>
      %36 = arith.addf %33, %35 : vector<4x1xf32>
      %37 = math.rsqrt %36 : vector<4x1xf32>
      %38 = arith.mulf %34, %37 : vector<4x1xf32>
      %c0_20 = arith.constant 0 : index
      %c0_21 = arith.constant 0 : index
      %39 = vector.load %arg13[%c0_20, %c0_21] : memref<4x1xf32, #tpu.memory_space<vmem>>, vector<4x1xf32>
      tpu.vector_store %arg13[%c0_20, %c0_21], %38 {strides = array<i32>} : memref<4x1xf32, #tpu.memory_space<vmem>>, vector<4x1xf32>,
      %c0_22 = arith.constant 0 : index
      %c0_23 = arith.constant 0 : index
      %40 = vector.load %arg6[%c0_22, %c0_23] : memref<4x1xf32, #tpu.memory_space<vmem>>, vector<4x1xf32>
      %c0_24 = arith.constant 0 : index
      %c0_25 = arith.constant 0 : index
      %41 = vector.load %arg13[%c0_24, %c0_25] : memref<4x1xf32, #tpu.memory_space<vmem>>, vector<4x1xf32>
      %42 = arith.mulf %26, %41 : vector<4x1xf32>
      %43 = arith.subf %40, %42 : vector<4x1xf32>
      %c0_26 = arith.constant 0 : index
      %c0_27 = arith.constant 0 : index
      %44 = vector.load %arg14[%c0_26, %c0_27] : memref<4x1xf32, #tpu.memory_space<vmem>>, vector<4x1xf32>
      tpu.vector_store %arg14[%c0_26, %c0_27], %43 {strides = array<i32>} : memref<4x1xf32, #tpu.memory_space<vmem>>, vector<4x1xf32>,
    } else {
    }
    %c2_i32_10 = arith.constant 2 : i32
    %21 = arith.cmpi eq, %arg0, %c2_i32_10 : i32
    %22 = arith.extui %21 : i1 to i32
    %c0_i32_11 = arith.constant 0 : i32
    %23 = arith.cmpi ne, %22, %c0_i32_11 : i32
    scf.if %23 {
      %24 = arith.index_cast %arg1 : i32 to index
      %c0 = arith.constant 0 : index
      %c0_12 = arith.constant 0 : index
      %25 = vector.load %arg8[%24, %c0, %c0_12] : memref<2x4x256xbf16, #tpu.memory_space<vmem>>, vector<1x4x256xbf16>
      %26 = vector.shape_cast %25 : vector<1x4x256xbf16> to vector<4x256xbf16>
      %27 = arith.extf %26 : vector<4x256xbf16> to vector<4x256xf32>
      %c0_13 = arith.constant 0 : index
      %c0_14 = arith.constant 0 : index
      %28 = vector.load %arg13[%c0_13, %c0_14] : memref<4x1xf32, #tpu.memory_space<vmem>>, vector<4x1xf32>
      %29 = vector.broadcast %28 : vector<4x1xf32> to vector<4x256xf32>
      %30 = arith.mulf %27, %29 : vector<4x256xf32>
      %c0_15 = arith.constant 0 : index
      %c0_16 = arith.constant 0 : index
      %31 = vector.load %arg14[%c0_15, %c0_16] : memref<4x1xf32, #tpu.memory_space<vmem>>, vector<4x1xf32>
      %32 = vector.broadcast %31 : vector<4x1xf32> to vector<4x256xf32>
      %33 = arith.addf %30, %32 : vector<4x256xf32>
      %c0_17 = arith.constant 0 : index
      %c0_18 = arith.constant 0 : index
      %c0_19 = arith.constant 0 : index
      %34 = vector.load %arg2[%c0_17, %c0_18, %c0_19] : memref<1x4x256xf32, #tpu.memory_space<vmem>>, vector<1x4x256xf32>
      %35 = vector.shape_cast %34 : vector<1x4x256xf32> to vector<4x256xf32>
      %36 = arith.addf %33, %35 : vector<4x256xf32>
      %cst = arith.constant 0.000000e+00 : f32
      %37 = vector.broadcast %cst : f32 to vector<4x256xf32>
      %38 = arith.maximumf %36, %37 : vector<4x256xf32>
      %c0_20 = arith.constant 0 : index
      %c0_21 = arith.constant 0 : index
      %c0_22 = arith.constant 0 : index
      %39 = vector.load %arg7[%c0_20, %c0_21, %c0_22] : memref<1x4x256xf32, #tpu.memory_space<vmem>>, vector<1x4x256xf32>
      %40 = vector.shape_cast %39 : vector<1x4x256xf32> to vector<4x256xf32>
      %41 = vector.shape_cast %38 : vector<4x256xf32> to vector<1x4x256xf32>
      tpu.vector_store %arg7[%c0_20, %c0_21, %c0_22], %41 {strides = array<i32>} : memref<1x4x256xf32, #tpu.memory_space<vmem>>, vector<1x4x256xf32>,
    } else {
    }
    return
  }
  func.func @transform_0(%arg0: i32, %arg1: i32) -> (i32, i32, i32) {
    %c0_i32 = arith.constant 0 : i32
    %c0_i32_0 = arith.constant 0 : i32
    %c0_i32_1 = arith.constant 0 : i32
    return %arg1, %c0_i32, %c0_i32_0 : i32, i32, i32
  }
  func.func @transform_1(%arg0: i32, %arg1: i32) -> (i32, i32) {
    %c0_i32 = arith.constant 0 : i32
    %c0_i32_0 = arith.constant 0 : i32
    %c0_i32_1 = arith.constant 0 : i32
    return %c0_i32, %c0_i32_0 : i32, i32
  }
  func.func @transform_2(%arg0: i32, %arg1: i32) -> (i32, i32) {
    %c0_i32 = arith.constant 0 : i32
    %c0_i32_0 = arith.constant 0 : i32
    %c0_i32_1 = arith.constant 0 : i32
    return %c0_i32, %c0_i32_0 : i32, i32
  }
  func.func @transform_3(%arg0: i32, %arg1: i32) -> (i32, i32) {
    %c0_i32 = arith.constant 0 : i32
    %c0_i32_0 = arith.constant 0 : i32
    %c0_i32_1 = arith.constant 0 : i32
    return %c0_i32, %c0_i32_0 : i32, i32
  }
  func.func @transform_4(%arg0: i32, %arg1: i32) -> (i32, i32) {
    %c0_i32 = arith.constant 0 : i32
    %c0_i32_0 = arith.constant 0 : i32
    %c0_i32_1 = arith.constant 0 : i32
    return %c0_i32, %c0_i32_0 : i32, i32
  }
  func.func @transform_5(%arg0: i32, %arg1: i32) -> (i32, i32, i32) {
    %c0_i32 = arith.constant 0 : i32
    %c0_i32_0 = arith.constant 0 : i32
    %c0_i32_1 = arith.constant 0 : i32
    return %arg1, %c0_i32, %c0_i32_0 : i32, i32, i32
  }
}

</mosaic_0001>

<bundles_post_ra>
// kernel: block_forward.1
= control target key start
LH: loop header
LB: loop body
LE: loop exit
PB: predicated region body
PF: predicated region fallthrough
CT: control target
= control target key end

     0   :  { %s1287_s18 = smov 0   ;;  %s1289_s19 = smov 0   ;;  %s1492_s0 = inlined_call_operand.vmem [shape: f32[2,4,256], index: 0, kind: input, shape index: {}]   ;;  %s1493_s1 = inlined_call_operand.vmem [shape: bf16[4,36], index: 1, kind: input, shape index: {}]   ;;  %s1494_s2 = inlined_call_operand.vmem [shape: bf16[4,36], index: 2, kind: input, shape index: {}]   ;;  %s1495_s3 = inlined_call_operand.vmem [shape: f32[4,1], index: 3, kind: input, shape index: {}]   ;;  %s1496_s4 = inlined_call_operand.vmem [shape: f32[4,1], index: 4, kind: input, shape index: {}]   ;;  %s1497_s5 = inlined_call_operand.vmem [shape: f32[2,4,256], index: 5, kind: output, shape index: {}]  }
   0x1   :  { %s1291_s20 = smov 0   ;;  %s1293_s21 = smov 0  }
   0x2   :  { %s1295_s22 = smov 0  }
   0x3 LB: > { %s24_s23 = sadd.s32 1, %s1224_s20  ;;  %s27_s24 = sadd.s32 1, %s1228_s21  ;;  %s1232_s22 = sphi %s1295_s22, %s15_s22   ;;  %s1228_s21 = sphi %s1293_s21, %s1517_s21   ;;  %s1224_s20 = sphi %s1291_s20, %s1516_s20   ;;  %s1220_s19 = sphi %s1289_s19, %s1515_s19   ;;  %s1216_s18 = sphi %s1287_s18, %s1514_s18  }
   0x4   : > { %p25_p0 = scmp.ge.s32.totalorder %s24_s23, 2  ;;  %p1088_p1 = scmp.ge.s32.totalorder %s1232_s22, 1 }
   0x5   : > { %p199_p2 = scmp.lt.s32.totalorder %s1232_s22, 7 }
   0x6   : > { %s1519_s23 = smov (%p25_p0, %s24_s23), 0  ;;  %s1521_s24 = smov (!%p25_p0, %s27_s24), %s1228_s21 }
   0x7   : > { %p200_p3 = pnand %p1088_p1, %p199_p2  ;;  %p29_p4 = scmp.ge.s32.totalorder %s1521_s24, 3 }
   0x8   : > { %p227_p5 = scmp.lt.s32.totalorder (!%p200_p3), %s1216_s18, 1  ;;  %p238_p6 = scmp.eq.s32.totalorder (!%p200_p3), %s1220_s19, 0 }
   0x9   : > { %s1523_s24 = smov (%p29_p4, %s1521_s24), 0  ;;  %203 = sbr.rel (%p200_p3) target bundleno = 1452 (0x5ac), region = 40 }
   0xa   : > { %p239_p7 = scmp.eq.s32.totalorder (!%p200_p3), %s1216_s18, 0 }
   0xc   : > { %p240_p8 = pnand (!%p200_p3), %p239_p7, %p238_p6 }
  0x10   : > { %s228_s25 = scalar_select %p227_p5, %s1216_s18, 1 }
  0x11   : > { %243 = sbr.rel (%p240_p8) target bundleno = 24 (0x18), region = 44  ;;  %v1234_v0 = vmov (!%p240_p8), 0.0  }
  0x12   : > { %s1112_s26 = sshll.u32 %s228_s25, 3  ;;  %244 = vst [vmem:[#allocation3] sm:$0xff] (!%p240_p8), %v1234_v0  ;;  %245 = vst [vmem:[#allocation3 + $0x8] sm:$0xff] (!%p240_p8), %v1234_v0 }
  0x13   : > { %s1328_s29 = scalar_lea.vmem %s1492_s0, %s1112_s26  ;;  %s1333_s7 = scalar_lea.vmem %s1497_s5, %s1112_s26 }
  0x18 PF: > { %p246_p9 = scmp.lt.s32.totalorder %s1220_s19, 2 }
  0x1a   : > { %p247_p10 = pnand %p246_p9, %p239_p7 }
  0x1b   : > { %vm251_vm0 = vcmask (!%p247_p10), 3072   ;;  %v1235_v1 = vmov (!%p247_p10), 0.0  }
  0x1c   : > { %250 = sbr.rel (%p247_p10) target bundleno = 35 (0x23), region = 48  ;;  %252 = vst.msk [vmem:[#allocation5] sm:$0xf] (!%p247_p10), %vm251_vm0, %v1235_v1  ;;  %253 = vst.msk [vmem:[#allocation6] sm:$0xf] (!%p247_p10), %vm251_vm0, %v1235_v1 }
  0x23 PF: > { %p1093_p11 = scmp.ne.s32.totalorder %s1220_s19, 0 }
  0x24   : > { %v257_v2 = vld [vmem:[%s1328_s29] sm:$0xff] (!%p1093_p11)  ;;  %s1236_s8 = smov (!%p1093_p11), 1   ;;  %s1237_s9 = smov (!%p1093_p11), 17   ;;  %v390_v11 = vld [vmem:[#allocation3 + $0xc] sm:$0xf] (!%p1093_p11)  ;;  %v1244_v16 = vmov (!%p1093_p11), 0   ;;  %v259_v17 = vlaneseq (!%p1093_p11) }
  0x25   : > { %256 = sbr.rel (%p1093_p11) target bundleno = 583 (0x247), region = 52  ;;  %258 = vst [vmem:[#allocation3 + $0x4] sm:$0xff] (!%p1093_p11), %v257_v2  ;;  %v393_v3 = vcombine.high (!%p1093_p11), %v257_v2, %v257_v2  ;;  %387 = vst [vmem:[#allocation4 + $0x20] sm:$0xf] (!%p1093_p11), %v257_v2  ;;  %s1238_s10 = smov (!%p1093_p11), 15   ;;  %v439_v14 = vcombine.low (!%p1093_p11), %v257_v2, %v257_v2  ;;  %534 = vmatprep.mubr.bf16.mxu0 (!%p1093_p11), %v1244_v16  ;;  %vm303_vm1 = vcmask (!%p1093_p11), 138240  }
  0x26   : > { %s1239_s11 = smov (!%p1093_p11), 16   ;;  %s1240_s12 = smov (!%p1093_p11), 127   ;;  %v416_v12 = vld [vmem:[#allocation3 + $0xc] sm:$0xf] (!%p1093_p11)  ;;  %v260_v18 = vand.u32 (!%p1093_p11), 127, %v259_v17  ;;  %vm368_vm3 = vcmask (!%p1093_p11), 7168  }
  0x27   : > { %388 = vst [vmem:[#allocation4 + $0x28] sm:$0xf] (!%p1093_p11), %v393_v3  ;;  %s1241_s13 = smov (!%p1093_p11), 113   ;;  %v1185_v13 = vld [vmem:[#allocation3 + $0xc] ss:$0 sps:$4 sm:$0xff] (!%p1093_p11)   ;;  %s1242_s14 = smov (!%p1093_p11), 112  }
  0x28   : > { %s1243_s15 = smov (!%p1093_p11), 111   ;;  %v455_v15 = vld [vmem:[#allocation3 + $0xc] sm:$0xf] (!%p1093_p11)  ;;  %v261_v19 = vadd.s32 (!%p1093_p11), 128, %v260_v18  ;;  %v266_v24 = vand.u32 (!%p1093_p11), 15, %v260_v18  ;;  %vm348_vm5 = vcmask (!%p1093_p11), 121856  }
  0x29   : > { %vm324_vm7 = vcmask (!%p1093_p11), 130048   ;;  %vm400_vm9 = vcmask (!%p1093_p11), 1039360   ;;  %vm426_vm10 = vcmask (!%p1093_p11), 924672   ;;  %vm447_vm11 = vcmask (!%p1093_p11), 916480   ;;  %s1114_s25 = sshll.u32 (!%p1093_p11), %s1216_s18, 2 }
  0x2a   : > { %v273_v20 = vand.u32 (!%p1093_p11), 15, %v261_v19  ;;  %vm1347_vm4 = vcmp.ge.s32.totalorder (!%p1093_p11), %v266_v24, 1  ;;  %vm1365_vm8 = vcmp.le.s32.totalorder (!%p1093_p11), %v266_v24, 14  ;;  %vm465_vm12 = vcmask (!%p1093_p11), 908288   ;;  %s558_s26 = scalar_lea.vmem (!%p1093_p11), [#allocation2], %s1114_s25 }
  0x2b   : > { %vm495_vm13 = vcmask (!%p1093_p11), 1041408   ;;  %vm491_vm14 = vcmask (!%p1093_p11), 293888   ;;  %vm561_vm15 = vcmask (!%p1093_p11), 1043456   ;;  %vm568_vm0 = vcmask (!%p1093_p11), 3072  }
  0x2c   : > { %v358_v4 = vld [vmem:[#allocation3 + $0x8] sm:$0xf]  ;;  %v357_v5 = vld [vmem:[#allocation3] sm:$0xff]  ;;  %vm1340_vm2 = vcmp.ge.s32.totalorder %v273_v20, 1  ;;  %vm1355_vm6 = vcmp.le.s32.totalorder %v273_v20, 14 }
  0x2d   : > { %366 = vrot.lane.b32.xlu0 %v358_v4, %s1236_s8  ;;  %362 = vrot.lane.b32.xlu1 %v357_v5, %s1236_s8  ;;  %v361_v6 = vcombine.high %v357_v5, %v357_v5  ;;  %v287_v7 = vld [vmem:[#allocation3 + $0x8] sm:$0xf]  ;;  %v316_v10 = vcombine.low %v357_v5, %v357_v5 }
  0x2e   : > { %v332_v8 = vld [vmem:[#allocation3 + $0x8] sm:$0xf] }
  0x2f   : > { %v1182_v9 = vld [vmem:[#allocation3 + $0x8] ss:$0 sps:$4 sm:$0xff]  }
  0x31   : > { %301 = vrot.lane.b32.xlu0 %v287_v7, %s1237_s9  ;;  %299 = vrot.lane.b32.xlu1 %v361_v6, %s1237_s9 }
  0x35   : > { %364 = vrot.lane.b32.xlu0 %v361_v6, %s1236_s8  ;;  %344 = vrot.lane.b32.xlu1 %v361_v6, %s1238_s10 }
  0x39   : > { %346 = vrot.lane.b32.xlu0 %v332_v8, %s1238_s10  ;;  %297 = vrot.lane.b32.xlu1 %v357_v5, %s1237_s9 }
  0x3d   : > { %320 = vrot.lane.b32.xlu0 %v357_v5, %s1239_s11  ;;  %322 = vrot.lane.b32.xlu1 %v1182_v9, %s1239_s11 }
  0x41   : > { %342 = vrot.lane.b32.xlu0 %v357_v5, %s1238_s10  ;;  %318 = vrot.lane.b32.xlu1 %v316_v10, %s1239_s11 }
  0x45   : > { %396 = vrot.lane.b32.xlu0 %v393_v3, %s1240_s12  ;;  %398 = vrot.lane.b32.xlu1 %v390_v11, %s1240_s12 }
  0x49   : > { %394 = vrot.lane.b32.xlu0 %v257_v2, %s1240_s12  ;;  %422 = vrot.lane.b32.xlu1 %v393_v3, %s1241_s13 }
  0x4d   : > { %424 = vrot.lane.b32.xlu0 %v416_v12, %s1241_s13  ;;  %420 = vrot.lane.b32.xlu1 %v257_v2, %s1241_s13 }
  0x51   : > { %443 = vrot.lane.b32.xlu0 %v257_v2, %s1242_s14  ;;  %445 = vrot.lane.b32.xlu1 %v1185_v13, %s1242_s14 }
  0x55   : > { %441 = vrot.lane.b32.xlu0 %v439_v14, %s1242_s14  ;;  %459 = vrot.lane.b32.xlu1 %v257_v2, %s1243_s15 }
  0x59   : > { %461 = vrot.lane.b32.xlu0 %v393_v3, %s1243_s15  ;;  %463 = vrot.lane.b32.xlu1 %v455_v15, %s1243_s15 }
  0x9f   : > { %v367_v21 = vpop.permute.xlu0 %366  ;;  %v363_v22 = vpop.permute.xlu1 %362 }
  0xa3   : > { %v302_v25 = vpop.permute.xlu0 %301  ;;  %v300_v26 = vpop.permute.xlu1 %299 }
  0xa4   : > { %v305_v27 = vsel %vm303_vm1, %v300_v26, %v302_v25 }
  0xa5   : > { %v309_v28 = vsel %vm1340_vm2, %v305_v27, 0.0 }
  0xa6   : > { %311 = vst [vmem:[#allocation4 + $0x8] sm:$0xf] %v309_v28 }
  0xa7   : > { %v365_v30 = vpop.permute.xlu0 %364  ;;  %v345_v31 = vpop.permute.xlu1 %344 }
  0xa8   : > { %v369_v32 = vsel %vm368_vm3, %v363_v22, %v365_v30  ;;  %v370_v33 = vsel %vm368_vm3, %v365_v30, %v367_v21 }
  0xa9   : > { %v373_v34 = vsel %vm1347_vm4, %v369_v32, 0.0  ;;  %v374_v35 = vsel %vm1340_vm2, %v370_v33, 0.0 }
  0xaa   : > { %v377_v36 = vrot.slane %v373_v34, 4  ;;  %v378_v37 = vrot.slane %v374_v35, 4  ;;  %v474_v35 = vld [vmem:[%s1493_s1] sm:$0x3] }
  0xab   : > { %v347_v39 = vpop.permute.xlu0 %346  ;;  %v298_v40 = vpop.permute.xlu1 %297 }
  0xac   : > { %381 = vst [vmem:[#allocation4 + $0x10] sm:$0xf0] %v377_v36  ;;  %382 = vst [vmem:[#allocation4 + $0x18] sm:$0xf0] %v378_v37  ;;  %v350_v41 = vsel %vm348_vm5, %v345_v31, %v347_v39  ;;  %v304_v42 = vsel %vm303_vm1, %v298_v40, %v300_v26 }
  0xad   : > { %v354_v43 = vsel %vm1355_vm6, %v350_v41, 0.0  ;;  %v308_v44 = vsel %vm1347_vm4, %v304_v42, 0.0 }
  0xae   : > { %356 = vst [vmem:[#allocation4 + $0x18] sm:$0xf] %v354_v43  ;;  %310 = vst [vmem:[#allocation4] sm:$0xf] %v308_v44 }
  0xaf   : > { %v321_v45 = vpop.permute.xlu0 %320  ;;  %v323_v46 = vpop.permute.xlu1 %322 }
  0xb0   : > { %v326_v47 = vsel %vm324_vm7, %v321_v45, %v323_v46 }
  0xb1   : > { %330 = vst [vmem:[#allocation4 + $0x8] sm:$0xf0] %v326_v47 }
  0xb3   : > { %v343_v49 = vpop.permute.xlu0 %342  ;;  %v319_v50 = vpop.permute.xlu1 %318 }
  0xb4   : > { %v349_v51 = vsel %vm348_vm5, %v343_v49, %v345_v31  ;;  %v325_v52 = vsel %vm324_vm7, %v319_v50, %v321_v45  ;;  %v560_v50 = vld [vmem:[#allocation5] sm:$0xf] }
  0xb5   : > { %v353_v53 = vsel %vm1365_vm8, %v349_v51, 0.0  ;;  %329 = vst [vmem:[#allocation4] sm:$0xf0] %v325_v52  ;;  %v478_v58 = vld [vmem:[#allocation4 + $0x18] sm:$0xff]  ;;  %v570_v52 = vld [vmem:[#allocation6] sm:$0xf] }
  0xb6   : > { %355 = vst [vmem:[#allocation4 + $0x10] sm:$0xf] %v353_v53 }
  0xb7   : > { %v397_v54 = vpop.permute.xlu0 %396  ;;  %v399_v55 = vpop.permute.xlu1 %398 }
  0xb8   : > { %v402_v56 = vsel %vm400_vm9, %v397_v54, %v399_v55  ;;  %v476_v57 = vld [vmem:[#allocation4 + $0x8] sm:$0xff] }
  0xb9   : > { %v406_v59 = vsel %vm1355_vm6, %v402_v56, 0.0  ;;  %v486_v60 = vpack.c.bf16 %v478_v58, %v476_v57 }
  0xba   : > { %v410_v61 = vrot.slane %v406_v59, 4 }
  0xbb   : > { %v395_v62 = vpop.permute.xlu0 %394  ;;  %502 = vmatprep.subr.bf16.mxu0 %v486_v60  ;;  %v423_v63 = vpop.permute.xlu1 %422 }
  0xbc   : > { %414 = vst [vmem:[#allocation4 + $0x28] sm:$0xf0] %v410_v61  ;;  %v401_v0 = vsel %vm400_vm9, %v395_v62, %v397_v54  ;;  %v475_v1 = vld [vmem:[#allocation4] sm:$0xff] }
  0xbd   : > { %v405_v2 = vsel %vm1365_vm8, %v401_v0, 0.0  ;;  %v477_v3 = vld [vmem:[#allocation4 + $0x10] sm:$0xff] }
  0xbe   : > { %v409_v4 = vrot.slane %v405_v2, 4  ;;  %v485_v5 = vpack.c.bf16 %v477_v3, %v475_v1 }
  0xbf   : > { %v425_v6 = vpop.permute.xlu0 %424  ;;  %v421_v7 = vpop.permute.xlu1 %420 }
  0xc0   : > { %413 = vst [vmem:[#allocation4 + $0x20] sm:$0xf0] %v409_v4  ;;  %v428_v8 = vsel %vm426_vm10, %v423_v63, %v425_v6  ;;  %v427_v9 = vsel %vm426_vm10, %v421_v7, %v423_v63  ;;  %503 = vmatpush1.bf16.msra.mxu0 %v485_v5 }
  0xc1   : > { %v432_v10 = vsel %vm1340_vm2, %v428_v8, 0.0  ;;  %v431_v11 = vsel %vm1347_vm4, %v427_v9, 0.0 }
  0xc2   : > { %434 = vst [vmem:[#allocation4 + $0x38] sm:$0xf] %v432_v10  ;;  %433 = vst [vmem:[#allocation4 + $0x30] sm:$0xf] %v431_v11 }
  0xc3   : > { %v444_v12 = vpop.permute.xlu0 %443  ;;  %v446_v13 = vpop.permute.xlu1 %445  ;;  %v480_v22 = vld [vmem:[#allocation4 + $0x28] sm:$0xff] }
  0xc4   : > { %v449_v14 = vsel %vm447_vm11, %v444_v12, %v446_v13 }
  0xc5   : > { %453 = vst [vmem:[#allocation4 + $0x38] sm:$0xf0] %v449_v14 }
  0xc7   : > { %v442_v15 = vpop.permute.xlu0 %441  ;;  %v460_v16 = vpop.permute.xlu1 %459  ;;  %v479_v27 = vld [vmem:[#allocation4 + $0x20] sm:$0xff] }
  0xc8   : > { %v448_v17 = vsel %vm447_vm11, %v442_v15, %v444_v12 }
  0xc9   : > { %452 = vst [vmem:[#allocation4 + $0x30] sm:$0xf0] %v448_v17 }
  0xcb   : > { %v462_v18 = vpop.permute.xlu0 %461  ;;  %v464_v19 = vpop.permute.xlu1 %463 }
  0xcc   : > { %v466_v20 = vsel %vm465_vm12, %v460_v16, %v462_v18  ;;  %v467_v21 = vsel %vm465_vm12, %v462_v18, %v464_v19  ;;  %v482_v23 = vld [vmem:[#allocation4 + $0x38] sm:$0xff] }
  0xcd   : > { %v470_v24 = vsel %vm1365_vm8, %v466_v20, 0.0  ;;  %v471_v25 = vsel %vm1355_vm6, %v467_v21, 0.0  ;;  %v488_v26 = vpack.c.bf16 %v482_v23, %v480_v22 }
  0xce   : > { %472 = vst [vmem:[#allocation4 + $0x40] sm:$0xf] %v470_v24  ;;  %473 = vst [vmem:[#allocation4 + $0x48] sm:$0xf] %v471_v25 }
  0xcf   : > { %504 = vmatprep.subr.bf16.mxu0 %v488_v26 }
  0xd0   : > { %v481_v28 = vld [vmem:[#allocation4 + $0x30] sm:$0xff] }
  0xd1   : > { %v487_v29 = vpack.c.bf16 %v481_v28, %v479_v27 }
  0xd3   : > { %505 = vmatpush1.bf16.msra.mxu0 %v487_v29 }
  0xd5   : > { %v484_v30 = vld [vmem:[#allocation4 + $0x48] sm:$0xf]  ;;  %v483_v31 = vld [vmem:[#allocation4 + $0x40] sm:$0xf] }
  0xd6   : > { %v490_v32 = vpack.c.bf16 %v484_v30, %v484_v30  ;;  %v489_v33 = vpack.c.bf16 %v483_v31, %v483_v31 }
  0xd8   : > { %1094 = vmatprep.subr.msk.bf16.mxu0 %vm495_vm13, %v490_v32  ;;  %v497_v34 = vsel %vm495_vm13, %v489_v33, 0 }
  0xd9   : > { %507 = vmatpush1.bf16.msra.mxu0 %v497_v34 }
  0xdc   : > { %1095 = vmatmul.mubr.msk.bf16.vlgmr.msra.gmra.mrb[0].mxu0 %vm491_vm14, %v474_v35 }
 0x1af   : > { %v536_v36 = vpop.f32.mrb[0].mxu0 }
 0x1b0   : > { %v538_v37 = vpop.f32.mrb[1].mxu0  ;;  %v562_v38 = vsel %vm561_vm15, %v536_v36, 0.0  ;;  %v571_v39 = vmul.f32 %v536_v36, %v536_v36 }
 0x1b1   : > { %v1096_v40 = vpack.c.bf16 %v538_v37, %v536_v36  ;;  %v582_v41 = vcombine.low %v536_v36, %v538_v37  ;;  %v540_v42 = vpop.f32.mrb[2].mxu0  ;;  %v563_v43 = vsel %vm561_vm15, %v538_v37, 0.0  ;;  %v572_v44 = vmul.f32 %v538_v37, %v538_v37 }
 0x1b2   : > { %v541_v45 = vpop.f32.mrb[3].mxu0  ;;  %v564_v46 = vadd.f32 %v563_v43, %v562_v38  ;;  %v573_v47 = vsel %vm561_vm15, %v571_v39, 0.0 }
 0x1b3   : > { %1099 = vst.sshfl [vmem:[%s558_s26] sm:$0x33 pattern:$0x76325410] %v1096_v40  ;;  %584 = vst [vmem:[%s1333_s7] sm:$0xff] %v582_v41  ;;  %v574_v48 = vsel %vm561_vm15, %v572_v44, 0.0 }
 0x1b4   : > { %565 = vadd.xlane.f32.xlu0 %v564_v46  ;;  %v575_v49 = vadd.f32 %v574_v48, %v573_v47 }
 0x1b6   : > { %576 = vadd.xlane.f32.xlu1 %v575_v49 }
 0x241   : > { %v566_v51 = vpop.xlane.xlu0 %565 }
 0x242   : > { %v567_v53 = vadd.f32 %v566_v51, %v560_v50 }
 0x243   : > { %v577_v54 = vpop.xlane.xlu1 %576 }
 0x244   : > { %569 = vst.msk [vmem:[#allocation5] sm:$0xf] %vm568_vm0, %v567_v53  ;;  %v578_v55 = vadd.f32 %v577_v54, %v570_v52 }
 0x246   : > { %579 = vst.msk [vmem:[#allocation6] sm:$0xf] %vm568_vm0, %v578_v55 }
 0x247 PF: > { %p1100_p12 = scmp.ne.s32.totalorder %s1220_s19, 1 }
 0x248   : > { %v594_v56 = vld [vmem:[#allocation7] sm:$0xf] (!%p1100_p12)  ;;  %v1245_v57 = vmov (!%p1100_p12), 0   ;;  %v608_v58 = vld [vmem:[#allocation8] sm:$0xf] (!%p1100_p12)  ;;  %s1246_s27 = smov (!%p1100_p12), 127   ;;  %v602_v0 = vlaneseq (!%p1100_p12) }
 0x249   : > { %588 = sbr.rel (%p1100_p12) target bundleno = 1267 (0x4f3), region = 56  ;;  %1186 = vset.pattern.permute.xlu0 (!%p1100_p12), %v1245_v57  ;;  %899 = vmatprep.mubr.bf16.mxu0 (!%p1100_p12), %v1245_v57  ;;  %v755_v59 = vld [vmem:[#allocation3 + $0xc] sm:$0xf] (!%p1100_p12)  ;;  %s1247_s28 = smov (!%p1100_p12), 113   ;;  %v1249_v62 = vmov (!%p1100_p12), 839922192  }
 0x24a   : > { %597 = vperm.xlu0 (!%p1100_p12), %1186, %v594_v56   ;;  %763 = vrot.lane.b32.xlu1 (!%p1100_p12), %v755_v59, %s1246_s27  ;;  %v1187_v60 = vld [vmem:[#allocation3 + $0xc] ss:$0 sps:$4 sm:$0xff] (!%p1100_p12)   ;;  %s1248_s30 = smov (!%p1100_p12), 112   ;;  %v600_v63 = vunpack.c.l.s4 (!%p1100_p12), %v1249_v62  ;;  %s1115_s6 = sshll.u32 (!%p1100_p12), %s1216_s18, 2  ;;  %v603_v2 = vshrl.u32 (!%p1100_p12), %v602_v0, 7  ;;  %v625_v28 = vand.u32 (!%p1100_p12), 127, %v602_v0 }
 0x24b   : > { %v781_v61 = vld [vmem:[#allocation3 + $0xc] sm:$0xf] (!%p1100_p12)  ;;  %s1398_s8 = scalar_lea.vmem (!%p1100_p12), [#allocation2], %s1115_s6  ;;  %s1250_s9 = smov (!%p1100_p12), 1   ;;  %vm733_vm1 = vcmask (!%p1100_p12), 7168   ;;  %vm668_vm4 = vcmask (!%p1100_p12), 138240  }
 0x24c   : > { %v601_v1 = vunpack.c.0.s8 (!%p1100_p12), %v600_v63  ;;  %v592_v4 = vld [vmem:[%s1398_s8] sm:$0xf] (!%p1100_p12)  ;;  %s1251_s10 = smov (!%p1100_p12), 17   ;;  %s1252_s11 = smov (!%p1100_p12), 15   ;;  %v820_v22 = vld [vmem:[#allocation3 + $0xc] sm:$0xf] (!%p1100_p12) }
 0x24d   : > { %v593_v6 = vunpack.c.l.bf16 (!%p1100_p12), %v592_v4  ;;  %s1253_s12 = smov (!%p1100_p12), 16   ;;  %s1254_s13 = smov (!%p1100_p12), 111   ;;  %v626_v31 = vadd.s32 (!%p1100_p12), 128, %v625_v28  ;;  %v631_v34 = vand.u32 (!%p1100_p12), 15, %v625_v28  ;;  %vm812_vm5 = vcmask (!%p1100_p12), 916480  }
 0x24e   : > { %611 = vperm.xlu0 (!%p1100_p12), %1186, %v608_v58   ;;  %810 = vrot.lane.b32.xlu1 (!%p1100_p12), %v1187_v60, %s1248_s30  ;;  %v604_v3 = vsub.s32 (!%p1100_p12), %v601_v1, %v603_v2  ;;  %vm713_vm6 = vcmask (!%p1100_p12), 121856   ;;  %vm765_vm9 = vcmask (!%p1100_p12), 1039360   ;;  %vm689_vm10 = vcmask (!%p1100_p12), 130048   ;;  %v922_v55 = vld [vmem:[#allocation5] sm:$0xf] (!%p1100_p12) }
 0x24f   : > { %v638_v35 = vand.u32 (!%p1100_p12), 15, %v626_v31  ;;  %vm1411_vm2 = vcmp.ge.s32.totalorder (!%p1100_p12), %v631_v34, 1  ;;  %vm1427_vm7 = vcmp.le.s32.totalorder (!%p1100_p12), %v631_v34, 14  ;;  %vm830_vm11 = vcmask (!%p1100_p12), 908288  }
 0x250   : > { %vm791_vm12 = vcmask 924672   ;;  %vm860_vm13 = vcmask 1041408   ;;  %vm856_vm14 = vcmask 293888   ;;  %vm923_vm15 = vcmask 1043456  }
 0x251   : > { %vm1415_vm3 = vcmp.ge.s32.totalorder %v638_v35, 1  ;;  %vm1431_vm8 = vcmp.le.s32.totalorder %v638_v35, 14  ;;  %vm930_vm0 = vcmask 3072  }
 0x252   : > { %789 = vrot.lane.b32.xlu0 %v781_v61, %s1247_s28 }
 0x2bc   : > { %v764_v23 = vpop.permute.xlu1 %763 }
 0x2c0   : > { %v811_v24 = vpop.permute.xlu1 %810 }
 0x2c9   : > { %v598_v5 = vpop.permute.xlu0 %597 }
 0x2ca   : > { %v605_v7 = vrot.slane %v598_v5, %v604_v3 }
 0x2cc   : > { %v607_v9 = vmul.f32 %v605_v7, %v593_v6 }
 0x2cd   : > { %v612_v8 = vpop.permute.xlu0 %611 }
 0x2ce   : > { %v619_v10 = vrot.slane %v612_v8, %v604_v3 }
 0x2d0   : > { %v621_v11 = vadd.f32 %v619_v10, %v607_v9 }
 0x2d1   : > { %v1407_v25 = vpop.permute.xlu0 %789 }
 0x2d2   : > { %v622_v12 = vmax.f32 %v621_v11, 0.0 }
 0x2d4   : > { %623 = vst [vmem:[#allocation3 + $0x4] sm:$0xff] %v622_v12  ;;  %v750_v13 = vcombine.high %v622_v12, %v622_v12  ;;  %752 = vst [vmem:[#allocation4 + $0x20] sm:$0xf] %v622_v12  ;;  %v804_v21 = vcombine.low %v622_v12, %v622_v12 }
 0x2d6   : > { %753 = vst [vmem:[#allocation4 + $0x28] sm:$0xf] %v750_v13 }
 0x2db   : > { %v723_v14 = vld [vmem:[#allocation3 + $0x8] sm:$0xf]  ;;  %v722_v15 = vld [vmem:[#allocation3] sm:$0xff] }
 0x2dc   : > { %731 = vrot.lane.b32.xlu1 %v723_v14, %s1250_s9  ;;  %727 = vrot.lane.b32.xlu0 %v722_v15, %s1250_s9  ;;  %v652_v16 = vld [vmem:[#allocation3 + $0x8] sm:$0xf]  ;;  %v726_v18 = vcombine.high %v722_v15, %v722_v15  ;;  %v681_v20 = vcombine.low %v722_v15, %v722_v15 }
 0x2dd   : > { %v697_v17 = vld [vmem:[#allocation3 + $0x8] sm:$0xf] }
 0x2de   : > { %v1190_v19 = vld [vmem:[#allocation3 + $0x8] ss:$0 sps:$4 sm:$0xff]  }
 0x2e0   : > { %666 = vrot.lane.b32.xlu0 %v652_v16, %s1251_s10  ;;  %662 = vrot.lane.b32.xlu1 %v722_v15, %s1251_s10 }
 0x2e4   : > { %711 = vrot.lane.b32.xlu0 %v697_v17, %s1252_s11  ;;  %785 = vrot.lane.b32.xlu1 %v622_v12, %s1247_s28 }
 0x2e8   : > { %685 = vrot.lane.b32.xlu0 %v722_v15, %s1253_s12  ;;  %824 = vrot.lane.b32.xlu1 %v622_v12, %s1254_s13 }
 0x2ec   : > { %707 = vrot.lane.b32.xlu0 %v722_v15, %s1252_s11  ;;  %729 = vrot.lane.b32.xlu1 %v726_v18, %s1250_s9 }
 0x2f0   : > { %759 = vrot.lane.b32.xlu0 %v622_v12, %s1246_s27  ;;  %664 = vrot.lane.b32.xlu1 %v726_v18, %s1251_s10 }
 0x2f4   : > { %808 = vrot.lane.b32.xlu0 %v622_v12, %s1248_s30  ;;  %709 = vrot.lane.b32.xlu1 %v726_v18, %s1252_s11 }
 0x2f8   : > { %761 = vrot.lane.b32.xlu0 %v750_v13, %s1246_s27  ;;  %687 = vrot.lane.b32.xlu1 %v1190_v19, %s1253_s12 }
 0x2fc   : > { %806 = vrot.lane.b32.xlu0 %v804_v21, %s1248_s30  ;;  %683 = vrot.lane.b32.xlu1 %v681_v20, %s1253_s12 }
 0x300   : > { %826 = vrot.lane.b32.xlu0 %v750_v13, %s1254_s13  ;;  %787 = vrot.lane.b32.xlu1 %v750_v13, %s1247_s28 }
 0x304   : > { %828 = vrot.lane.b32.xlu1 %v820_v22, %s1254_s13 }
 0x34e   : > { %v732_v26 = vpop.permute.xlu1 %731  ;;  %v728_v27 = vpop.permute.xlu0 %727 }
 0x352   : > { %v667_v29 = vpop.permute.xlu0 %666  ;;  %v663_v30 = vpop.permute.xlu1 %662 }
 0x356   : > { %v712_v32 = vpop.permute.xlu0 %711  ;;  %v1409_v33 = vpop.permute.xlu1 %785 }
 0x35a   : > { %v686_v36 = vpop.permute.xlu0 %685  ;;  %v825_v37 = vpop.permute.xlu1 %824 }
 0x35e   : > { %v708_v40 = vpop.permute.xlu0 %707  ;;  %v730_v41 = vpop.permute.xlu1 %729 }
 0x35f   : > { %v734_v42 = vsel %vm733_vm1, %v728_v27, %v730_v41  ;;  %v735_v43 = vsel %vm733_vm1, %v730_v41, %v732_v26 }
 0x360   : > { %v738_v44 = vsel %vm1411_vm2, %v734_v42, 0.0  ;;  %v739_v45 = vsel %vm1415_vm3, %v735_v43, 0.0 }
 0x361   : > { %v742_v46 = vrot.slane %v738_v44, 4  ;;  %v743_v47 = vrot.slane %v739_v45, 4 }
 0x362   : > { %v760_v48 = vpop.permute.xlu0 %759  ;;  %v665_v49 = vpop.permute.xlu1 %664 }
 0x363   : > { %746 = vst [vmem:[#allocation4 + $0x10] sm:$0xf0] %v742_v46  ;;  %747 = vst [vmem:[#allocation4 + $0x18] sm:$0xf0] %v743_v47  ;;  %v669_v50 = vsel %vm668_vm4, %v663_v30, %v665_v49  ;;  %v670_v51 = vsel %vm668_vm4, %v665_v49, %v667_v29 }
 0x364   : > { %v673_v52 = vsel %vm1411_vm2, %v669_v50, 0.0  ;;  %v674_v53 = vsel %vm1415_vm3, %v670_v51, 0.0 }
 0x365   : > { %675 = vst [vmem:[#allocation4] sm:$0xf] %v673_v52  ;;  %676 = vst [vmem:[#allocation4 + $0x8] sm:$0xf] %v674_v53 }
 0x366   : > { %v809_v56 = vpop.permute.xlu0 %808  ;;  %v710_v57 = vpop.permute.xlu1 %709 }
 0x367   : > { %v814_v58 = vsel %vm812_vm5, %v809_v56, %v811_v24  ;;  %v714_v59 = vsel %vm713_vm6, %v708_v40, %v710_v57  ;;  %v715_v60 = vsel %vm713_vm6, %v710_v57, %v712_v32  ;;  %v839_v40 = vld [vmem:[%s1494_s2] sm:$0x3]  ;;  %v932_v57 = vld [vmem:[#allocation6] sm:$0xf] }
 0x368   : > { %818 = vst [vmem:[#allocation4 + $0x38] sm:$0xf0] %v814_v58  ;;  %v718_v61 = vsel %vm1427_vm7, %v714_v59, 0.0  ;;  %v719_v62 = vsel %vm1431_vm8, %v715_v60, 0.0 }
 0x369   : > { %720 = vst [vmem:[#allocation4 + $0x10] sm:$0xf] %v718_v61  ;;  %721 = vst [vmem:[#allocation4 + $0x18] sm:$0xf] %v719_v62 }
 0x36a   : > { %v762_v63 = vpop.permute.xlu0 %761  ;;  %v688_v0 = vpop.permute.xlu1 %687 }
 0x36b   : > { %v766_v1 = vsel %vm765_vm9, %v760_v48, %v762_v63  ;;  %v767_v2 = vsel %vm765_vm9, %v762_v63, %v764_v23  ;;  %v691_v3 = vsel %vm689_vm10, %v686_v36, %v688_v0 }
 0x36c   : > { %v770_v4 = vsel %vm1427_vm7, %v766_v1, 0.0  ;;  %v771_v5 = vsel %vm1431_vm8, %v767_v2, 0.0  ;;  %695 = vst [vmem:[#allocation4 + $0x8] sm:$0xf0] %v691_v3 }
 0x36d   : > { %v774_v6 = vrot.slane %v770_v4, 4  ;;  %v775_v7 = vrot.slane %v771_v5, 4 }
 0x36e   : > { %v807_v8 = vpop.permute.xlu0 %806  ;;  %v684_v9 = vpop.permute.xlu1 %683 }
 0x36f   : > { %778 = vst [vmem:[#allocation4 + $0x20] sm:$0xf0] %v774_v6  ;;  %779 = vst [vmem:[#allocation4 + $0x28] sm:$0xf0] %v775_v7  ;;  %v813_v10 = vsel %vm812_vm5, %v807_v8, %v809_v56  ;;  %v690_v11 = vsel %vm689_vm10, %v684_v9, %v686_v36 }
 0x370   : > { %817 = vst [vmem:[#allocation4 + $0x30] sm:$0xf0] %v813_v10  ;;  %694 = vst [vmem:[#allocation4] sm:$0xf0] %v690_v11  ;;  %v843_v18 = vld [vmem:[#allocation4 + $0x18] sm:$0xff]  ;;  %v842_v26 = vld [vmem:[#allocation4 + $0x10] sm:$0xff] }
 0x372   : > { %v827_v12 = vpop.permute.xlu0 %826  ;;  %v788_v13 = vpop.permute.xlu1 %787 }
 0x373   : > { %v831_v14 = vsel %vm830_vm11, %v825_v37, %v827_v12  ;;  %v792_v15 = vsel %vm791_vm12, %v1409_v33, %v788_v13  ;;  %v793_v16 = vsel %vm791_vm12, %v788_v13, %v1407_v25  ;;  %v841_v17 = vld [vmem:[#allocation4 + $0x8] sm:$0xff] }
 0x374   : > { %v835_v19 = vsel %vm1427_vm7, %v831_v14, 0.0  ;;  %v796_v20 = vsel %vm1411_vm2, %v792_v15, 0.0  ;;  %v797_v21 = vsel %vm1415_vm3, %v793_v16, 0.0  ;;  %v851_v22 = vpack.c.bf16 %v843_v18, %v841_v17 }
 0x375   : > { %837 = vst [vmem:[#allocation4 + $0x40] sm:$0xf] %v835_v19  ;;  %798 = vst [vmem:[#allocation4 + $0x30] sm:$0xf] %v796_v20 }
 0x376   : > { %799 = vst [vmem:[#allocation4 + $0x38] sm:$0xf] %v797_v21  ;;  %867 = vmatprep.subr.bf16.mxu0 %v851_v22  ;;  %v829_v23 = vpop.permute.xlu1 %828  ;;  %v845_v29 = vld [vmem:[#allocation4 + $0x28] sm:$0xff]  ;;  %v844_v30 = vld [vmem:[#allocation4 + $0x20] sm:$0xff] }
 0x377   : > { %v832_v24 = vsel %vm830_vm11, %v827_v12, %v829_v23  ;;  %v840_v25 = vld [vmem:[#allocation4] sm:$0xff] }
 0x378   : > { %v836_v27 = vsel %vm1431_vm8, %v832_v24, 0.0  ;;  %v850_v28 = vpack.c.bf16 %v842_v26, %v840_v25 }
 0x379   : > { %838 = vst [vmem:[#allocation4 + $0x48] sm:$0xf] %v836_v27 }
 0x37a   : > { %868 = vmatpush1.bf16.msra.mxu0 %v850_v28 }
 0x37c   : > { %v846_v32 = vld [vmem:[#allocation4 + $0x30] sm:$0xff]  ;;  %v848_v33 = vld [vmem:[#allocation4 + $0x40] sm:$0xf] }
 0x37d   : > { %v847_v31 = vld [vmem:[#allocation4 + $0x38] sm:$0xff]  ;;  %v852_v35 = vpack.c.bf16 %v846_v32, %v844_v30  ;;  %v854_v36 = vpack.c.bf16 %v848_v33, %v848_v33 }
 0x37e   : > { %v853_v34 = vpack.c.bf16 %v847_v31, %v845_v29 }
 0x37f   : > { %v862_v39 = vsel %vm860_vm13, %v854_v36, 0 }
 0x380   : > { %869 = vmatprep.subr.bf16.mxu0 %v853_v34  ;;  %v849_v37 = vld [vmem:[#allocation4 + $0x48] sm:$0xf] }
 0x381   : > { %870 = vmatpush1.bf16.msra.mxu0 %v852_v35  ;;  %v855_v38 = vpack.c.bf16 %v849_v37, %v849_v37 }
 0x383   : > { %1103 = vmatprep.subr.msk.bf16.mxu0 %vm860_vm13, %v855_v38 }
 0x385   : > { %872 = vmatpush1.bf16.msra.mxu0 %v862_v39 }
 0x388   : > { %1104 = vmatmul.mubr.msk.bf16.vlgmr.msra.gmra.mrb[0].mxu0 %vm856_vm14, %v839_v40 }
 0x45b   : > { %v901_v41 = vpop.f32.mrb[0].mxu0 }
 0x45c   : > { %v903_v42 = vpop.f32.mrb[1].mxu0  ;;  %v924_v43 = vsel %vm923_vm15, %v901_v41, 0.0  ;;  %v933_v44 = vmul.f32 %v901_v41, %v901_v41 }
 0x45d   : > { %v1105_v45 = vpack.c.bf16 %v903_v42, %v901_v41  ;;  %v944_v46 = vcombine.low %v901_v41, %v903_v42  ;;  %v905_v47 = vpop.f32.mrb[2].mxu0  ;;  %v925_v48 = vsel %vm923_vm15, %v903_v42, 0.0  ;;  %v934_v49 = vmul.f32 %v903_v42, %v903_v42 }
 0x45e   : > { %v906_v50 = vpop.f32.mrb[3].mxu0  ;;  %v926_v51 = vadd.f32 %v925_v48, %v924_v43  ;;  %v935_v52 = vsel %vm923_vm15, %v933_v44, 0.0 }
 0x45f   : > { %1106 = vst.sshfl [vmem:[%s1398_s8] sm:$0x33 pattern:$0x76325410] %v1105_v45  ;;  %946 = vst [vmem:[%s1333_s7] sm:$0xff] %v944_v46  ;;  %v936_v53 = vsel %vm923_vm15, %v934_v49, 0.0 }
 0x460   : > { %927 = vadd.xlane.f32.xlu0 %v926_v51  ;;  %v937_v54 = vadd.f32 %v936_v53, %v935_v52 }
 0x462   : > { %938 = vadd.xlane.f32.xlu1 %v937_v54 }
 0x4ed   : > { %v928_v56 = vpop.xlane.xlu0 %927 }
 0x4ee   : > { %v929_v58 = vadd.f32 %v928_v56, %v922_v55 }
 0x4ef   : > { %v939_v59 = vpop.xlane.xlu1 %938 }
 0x4f0   : > { %931 = vst.msk [vmem:[#allocation5] sm:$0xf] %vm930_vm0, %v929_v58  ;;  %v940_v60 = vadd.f32 %v939_v59, %v932_v57 }
 0x4f2   : > { %941 = vst.msk [vmem:[#allocation6] sm:$0xf] %vm930_vm0, %v940_v60 }
 0x4f3 PF: > { %p947_p13 = scmp.eq.s32.totalorder %s1216_s18, 1 }
 0x4f5   : > { %p948_p0 = pnand %p947_p13, %p246_p9 }
 0x4f6   : > { %v960_v5 = vld [vmem:[%s1495_s3] sm:$0xf] (!%p948_p0)  ;;  %vm964_vm1 = vcmask (!%p948_p0), 3072  }
 0x4f7   : > { %951 = sbr.rel (%p948_p0) target bundleno = 1308 (0x51c), region = 60  ;;  %v952_v61 = vld [vmem:[#allocation5] sm:$0xf] (!%p948_p0)  ;;  %v966_v8 = vld [vmem:[%s1496_s4] sm:$0xf] (!%p948_p0) }
 0x4f8   : > { %v954_v63 = vmul.f32 (!%p948_p0), 0.001953125, %v952_v61 }
 0x4f9   : > { %v955_v62 = vld [vmem:[#allocation6] sm:$0xf] (!%p948_p0) }
 0x4fa   : > { %v956_v0 = vmul.f32 (!%p948_p0), 0.001953125, %v955_v62  ;;  %v957_v1 = vmul.f32 (!%p948_p0), %v954_v63, %v954_v63 }
 0x4fc   : > { %v958_v2 = vsub.f32 (!%p948_p0), %v956_v0, %v957_v1 }
 0x4fe   : > { %v959_v3 = vmax.f32 %v958_v2, 0.0 }
 0x500   : > { %v961_v4 = vadd.f32 1e-05, %v959_v3 }
 0x502   : > { %1191 = vrsqrt.f32 %v961_v4 }
 0x50c   : > { %v1192_v6 = vpop.eup %1191 }
 0x50d   : > { %v963_v7 = vmul.f32 %v1192_v6, %v960_v5 }
 0x50f   : > { %965 = vst.msk [vmem:[#allocation7] sm:$0xf] %vm964_vm1, %v963_v7 }
 0x516   : > { %v967_v9 = vld [vmem:[#allocation7] sm:$0xf] }
 0x517   : > { %v968_v10 = vmul.f32 %v967_v9, %v954_v63 }
 0x519   : > { %v969_v11 = vsub.f32 %v966_v8, %v968_v10 }
 0x51b   : > { %970 = vst.msk [vmem:[#allocation8] sm:$0xf] %vm964_vm1, %v969_v11 }
 0x51c PF: > { %p1107_p1 = scmp.ne.s32.totalorder %s1220_s19, 2 }
 0x51d   : > { %v980_v12 = vld [vmem:[#allocation7] sm:$0xf] (!%p1107_p1)  ;;  %v1255_v13 = vmov (!%p1107_p1), 0   ;;  %v1256_v15 = vmov (!%p1107_p1), 839922192   ;;  %v988_v17 = vlaneseq (!%p1107_p1)  ;;  %s1116_s27 = sshll.u32 (!%p1107_p1), %s1216_s18, 2 }
 0x51e   : > { %974 = sbr.rel (%p1107_p1) target bundleno = 1452 (0x5ac), region = 64  ;;  %1193 = vset.pattern.permute.xlu0 (!%p1107_p1), %v1255_v13  ;;  %v986_v16 = vunpack.c.l.s4 (!%p1107_p1), %v1256_v15  ;;  %s977_s28 = scalar_lea.vmem (!%p1107_p1), [#allocation2], %s1116_s27  ;;  %v1008_v28 = vld [vmem:[%s1328_s29] sm:$0xff] (!%p1107_p1) }
 0x51f   : > { %983 = vperm.xlu0 (!%p1107_p1), %1193, %v980_v12   ;;  %v989_v19 = vshrl.u32 (!%p1107_p1), %v988_v17, 7  ;;  %v978_v21 = vld [vmem:[%s977_s28] sm:$0xf] (!%p1107_p1) }
 0x520   : > { %v987_v18 = vunpack.c.0.s8 (!%p1107_p1), %v986_v16  ;;  %v979_v23 = vunpack.c.l.bf16 (!%p1107_p1), %v978_v21 }
 0x522   : > { %v994_v14 = vld [vmem:[#allocation8] sm:$0xf] (!%p1107_p1)  ;;  %v990_v20 = vsub.s32 (!%p1107_p1), %v987_v18, %v989_v19 }
 0x523   : > { %997 = vperm.xlu0 (!%p1107_p1), %1193, %v994_v14  }
 0x59e   : > { %v984_v22 = vpop.permute.xlu0 %983 }
 0x59f   : > { %v991_v24 = vrot.slane %v984_v22, %v990_v20 }
 0x5a1   : > { %v993_v26 = vmul.f32 %v991_v24, %v979_v23 }
 0x5a2   : > { %v998_v25 = vpop.permute.xlu0 %997 }
 0x5a3   : > { %v1005_v27 = vrot.slane %v998_v25, %v990_v20 }
 0x5a5   : > { %v1007_v29 = vadd.f32 %v1005_v27, %v993_v26 }
 0x5a7   : > { %v1009_v30 = vadd.f32 %v1008_v28, %v1007_v29 }
 0x5a9   : > { %v1010_v31 = vmax.f32 %v1009_v30, 0.0 }
 0x5ab   : > { %1011 = vst [vmem:[%s1333_s7] sm:$0xff] %v1010_v31 }
 0x5ac PF: > { %s15_s22 = sadd.s32 1, %s1232_s22   ;;  %s1514_s18 = smov %s1224_s20 }
 0x5ad   : > { %p12_p2 = scmp.ge.s32.totalorder %s15_s22, 8   ;;  %s1515_s19 = smov %s1228_s21 }
 0x5ae   : > { %s1516_s20 = smov %s1519_s23  ;;  %s1517_s21 = smov %s1523_s24 }
 0x5af   :  { %14 = sbr.rel (!%p12_p2) target bundleno = 3 (0x3), region = 97 }

</bundles_post_ra>
